<compile_context>
chip_gen: v5e
topology: v5e:2x2
jax: 0.10.0
libtpu: 0.0.40
codegen_flags: <defaults>
</compile_context>

<pallas_src>
import functools
import math

import jax
import jax.numpy as jnp
from jax.experimental import pallas as pl
from jax.experimental.pallas import tpu as pltpu


# ---------------------------------------------------------------------------
# Fused forward kernel: one grid step handles TB batch elements.
# ---------------------------------------------------------------------------
def _it_forward_kernel(x_ref,        # (TB, N, L)  f32  series (pre-transposed)
                       emb_w_ref,    # (L, D)      bf16
                       wqkv_ref,     # (E, D, 3D)  bf16
                       wo_ref,       # (E, D, D)   bf16
                       w1_ref,       # (E, D, F)   bf16
                       w2_ref,       # (E, F, D)   bf16
                       proj_w_ref,   # (D, P)      bf16
                       small_ref,    # (4 + 8E, W) f32  packed biases / LN params
                       o_ref,        # (TB, N, P)  f32
                       *, n_heads):
    f32 = jnp.float32
    bf16 = jnp.bfloat16

    tb, n_vars, seq_len = x_ref.shape
    e_layers, d_model, _ = wqkv_ref.shape
    d_ff = w2_ref.shape[1]
    pred_len = proj_w_ref.shape[-1]
    m = tb * n_vars
    dk = d_model // n_heads
    scale = 1.0 / math.sqrt(dk)

    def mm(a, b):
        # bf16 MXU operands (weights already bf16 -> no convert emitted for
        # them), f32 accumulation.
        return jnp.dot(a.astype(bf16), b.astype(bf16),
                       preferred_element_type=f32)

    def layernorm(x, g, b):
        mu = jnp.mean(x, axis=-1, keepdims=True)
        xc = x - mu
        var = jnp.mean(xc * xc, axis=-1, keepdims=True)
        return xc * jax.lax.rsqrt(var + 1e-5) * g + b

    def gelu_exact(x):
        # 0.5 * x * (1 + erf(x / sqrt(2))); erf via Abramowitz & Stegun
        # 7.1.26 (|err| < 1.5e-7), built only from exp / mul / where.
        z = x * (1.0 / math.sqrt(2.0))
        az = jnp.abs(z)
        t = 1.0 / (1.0 + 0.3275911 * az)
        poly = t * (0.254829592 + t * (-0.284496736 + t * (1.421413741
                    + t * (-1.453152027 + t * 1.061405429))))
        erf_abs = 1.0 - poly * jnp.exp(-az * az)
        erf_z = jnp.where(z < 0.0, -erf_abs, erf_abs)
        return 0.5 * x * (1.0 + erf_z)

    # --- non-stationary series normalization (time along lanes) ------------
    xv = x_ref[...].astype(f32).reshape(m, seq_len)          # (TB*N, L)
    mean = jnp.mean(xv, axis=-1, keepdims=True)
    xc = xv - mean
    var = jnp.mean(xc * xc, axis=-1, keepdims=True)          # unbiased=False
    std = jnp.sqrt(var + 1e-5)
    tokens = xc / std

    # --- packed small parameters (static row layout, see pack_params) ------
    emb_b = small_ref[0:1, :d_model]
    norm_g = small_ref[1:2, :d_model]
    norm_b = small_ref[2:3, :d_model]
    proj_b = small_ref[3:4, :pred_len]

    # --- inverted embedding: each variate's series -> a d_model token ------
    h = mm(tokens, emb_w_ref[...]) + emb_b                   # (TB*N, D)

    # --- block-diagonal mask: tokens of different batch elements never mix -
    if tb > 1:
        r = jax.lax.broadcasted_iota(jnp.int32, (m, m), 0).astype(f32)
        c = jax.lax.broadcasted_iota(jnp.int32, (m, m), 1).astype(f32)
        rb = jnp.floor((r + 0.5) * (1.0 / n_vars))           # batch id of row
        cb = jnp.floor((c + 0.5) * (1.0 / n_vars))           # batch id of col
        amask = jnp.where(rb == cb, 0.0, -1e30).astype(f32)
    else:
        amask = None

    # --- encoder layers (statically unrolled; weights VMEM-resident) -------
    for l in range(e_layers):
        base = 4 + 8 * l
        bqkv = small_ref[base + 0:base + 1, :3 * d_model]
        bo = small_ref[base + 1:base + 2, :d_model]
        b1 = small_ref[base + 2:base + 3, :d_ff]
        b2 = small_ref[base + 3:base + 4, :d_model]
        ln1_g = small_ref[base + 4:base + 5, :d_model]
        ln1_b = small_ref[base + 5:base + 6, :d_model]
        ln2_g = small_ref[base + 6:base + 7, :d_model]
        ln2_b = small_ref[base + 7:base + 8, :d_model]

        qkv = mm(h, wqkv_ref[l]) + bqkv                      # (TB*N, 3D)
        q = qkv[:, :d_model] * scale                         # fold 1/sqrt(dk)
        k = qkv[:, d_model:2 * d_model]
        v = qkv[:, 2 * d_model:]

        # Multi-head attention on the flattened tokens; head contexts are
        # concatenated and hit Wo exactly once.
        head_ctx = []
        for hd in range(n_heads):
            lo = hd * dk
            s = mm(q[:, lo:lo + dk], k[:, lo:lo + dk].T)     # (M, M)
            if amask is not None:
                s = s + amask
            s = s - jnp.max(s, axis=-1, keepdims=True)
            p = jnp.exp(s)
            p = p / jnp.sum(p, axis=-1, keepdims=True)       # exact softmax
            head_ctx.append(mm(p, v[:, lo:lo + dk]))         # (M, dk)
        ctx = jnp.concatenate(head_ctx, axis=-1)             # (M, D)
        attn = mm(ctx, wo_ref[l]) + bo

        x1 = layernorm(h + attn, ln1_g, ln1_b)               # norm1
        y = gelu_exact(mm(x1, w1_ref[l]) + b1)               # conv1(1x1)+gelu
        y = mm(y, w2_ref[l]) + b2                            # conv2(1x1)
        h = layernorm(x1 + y, ln2_g, ln2_b)                  # norm2

    # --- final norm + projection + fused de-normalization ------------------
    h = layernorm(h, norm_g, norm_b)
    yp = mm(h, proj_w_ref[...]) + proj_b                     # (TB*N, P)
    out = yp * std + mean                                    # de-normalize
    o_ref[...] = out.reshape(tb, n_vars, pred_len).astype(o_ref.dtype)


# ---------------------------------------------------------------------------
# Wrapper
# ---------------------------------------------------------------------------
def _resident_spec(arr):
    nd = arr.ndim

    def idx(b):
        return (0,) * nd

    return pl.BlockSpec(arr.shape, idx)


def it_forward(packed, x_enc, n_heads, batch_tiles=1):
    """x_enc: (B, seq_len, N). Returns (B, pred_len, N) like IT.forward."""
    B, L, N = x_enc.shape
    assert B % batch_tiles == 0, "batch_tiles must divide the batch size"
    tb = B // batch_tiles
    pred_len = packed["proj_w"].shape[-1]

    # Layout plumbing stays in the wrapper: variates on sublanes, time on
    # lanes going in; lane-dense (N, P) tiles coming out.
    x_t = jnp.transpose(x_enc, (0, 2, 1))                    # (B, N, L)

    weights = (packed["emb_w"], packed["wqkv"], packed["wo"], packed["w1"],
               packed["w2"], packed["proj_w"], packed["small"])
    kernel = functools.partial(_it_forward_kernel, n_heads=n_heads)

    out_nvp = pl.pallas_call(
        kernel,
        grid=(batch_tiles,),
        in_specs=[pl.BlockSpec((tb, N, L), lambda b: (b, 0, 0))]
                 + [_resident_spec(w) for w in weights],
        out_specs=pl.BlockSpec((tb, N, pred_len), lambda b: (b, 0, 0)),
        out_shape=jax.ShapeDtypeStruct((B, N, pred_len), jnp.float32),
        compiler_params=pltpu.CompilerParams(
            # batch tiles are independent -> megacore split on v7x when
            # batch_tiles > 1; harmless no-op with a single grid step.
            dimension_semantics=("parallel",),
            vmem_limit_bytes=32 * 1024 * 1024,
        ),
    )(x_t, *weights)

    return jnp.transpose(out_nvp, (0, 2, 1))                 # (B, pred_len, N)


# ---------------------------------------------------------------------------
# Parameter packing: pre-cast matmul weights to bf16 and fold all biases /
# LayerNorm params into one small f32 array (static row layout used above).
# ---------------------------------------------------------------------------
def pack_params(params, weight_dtype=jnp.bfloat16):
    E, D, _ = params["wqkv"].shape
    F = params["w1"].shape[-1]
    P = params["proj_w"].shape[-1]
    width = max(3 * D, D, F, P)

    def row(v):
        v = jnp.asarray(v, jnp.float32).reshape(-1)
        return jnp.pad(v, (0, width - v.shape[0]))

    rows = [row(params["emb_b"]), row(params["norm_g"]),
            row(params["norm_b"]), row(params["proj_b"])]
    for l in range(E):
        rows += [row(params["bqkv"][l]), row(params["bo"][l]),
                 row(params["b1"][l]), row(params["b2"][l]),
                 row(params["ln1_g"][l]), row(params["ln1_b"][l]),
                 row(params["ln2_g"][l]), row(params["ln2_b"][l])]
    small = jnp.stack(rows, axis=0)                          # (4 + 8E, width)

    return dict(
        emb_w=params["emb_w"].astype(weight_dtype),
        wqkv=params["wqkv"].astype(weight_dtype),
        wo=params["wo"].astype(weight_dtype),
        w1=params["w1"].astype(weight_dtype),
        w2=params["w2"].astype(weight_dtype),
        proj_w=params["proj_w"].astype(weight_dtype),
        small=small,
    )


# ---------------------------------------------------------------------------
# Deterministic synthetic parameter init (layers stacked along e_layers).
# ---------------------------------------------------------------------------
def init_params(key, seq_len, pred_len, d_model, d_ff, e_layers):
    ks = jax.random.split(key, 6)
    f32 = jnp.float32

    def dense(k, *shape):
        return jax.random.normal(k, shape, f32) * 0.1

    return dict(
        emb_w=dense(ks[0], seq_len, d_model),
        emb_b=jnp.zeros((d_model,), f32),
        wqkv=dense(ks[1], e_layers, d_model, 3 * d_model),
        bqkv=jnp.zeros((e_layers, 3 * d_model), f32),
        wo=dense(ks[2], e_layers, d_model, d_model),
        bo=jnp.zeros((e_layers, d_model), f32),
        w1=dense(ks[3], e_layers, d_model, d_ff),
        b1=jnp.zeros((e_layers, d_ff), f32),
        w2=dense(ks[4], e_layers, d_ff, d_model),
        b2=jnp.zeros((e_layers, d_model), f32),
        ln1_g=jnp.ones((e_layers, d_model), f32),
        ln1_b=jnp.zeros((e_layers, d_model), f32),
        ln2_g=jnp.ones((e_layers, d_model), f32),
        ln2_b=jnp.zeros((e_layers, d_model), f32),
        norm_g=jnp.ones((d_model,), f32),
        norm_b=jnp.zeros((d_model,), f32),
        proj_w=dense(ks[5], d_model, pred_len),
        proj_b=jnp.zeros((pred_len,), f32),
    )


if __name__ == "__main__":
    B, seq_len, N_vars = 2, 16, 4
    pred_len, d_model, n_heads, d_ff, e_layers = 8, 32, 4, 64, 2

    key = jax.random.PRNGKey(0)
    kx, kp = jax.random.split(key)
    x_enc = jax.random.normal(kx, (B, seq_len, N_vars), jnp.float32)
    # x_mark_enc / x_dec / x_mark_dec are unused by the forecast path.

    params = init_params(kp, seq_len, pred_len, d_model, d_ff, e_layers)
    packed = pack_params(params)   # bf16 weight cast + small-param packing, done once

    fwd = jax.jit(it_forward, static_argnums=(2, 3))
    out = jax.block_until_ready(fwd(packed, x_enc, n_heads, 1))

    assert out.shape == (B, pred_len, N_vars), out.shape
    assert bool(jnp.all(jnp.isfinite(out)))
    print("KERNEL_OK")
</pallas_src>

<mosaic_0001>
module attributes {stable_mosaic.version = 11 : i64} {
  func.func @_it_forward_kernel(%arg0: i32, %arg1: memref<2x4x16xf32, #tpu.memory_space<vmem>>, %arg2: memref<16x32xbf16, #tpu.memory_space<vmem>>, %arg3: memref<2x32x96xbf16, #tpu.memory_space<vmem>>, %arg4: memref<2x32x32xbf16, #tpu.memory_space<vmem>>, %arg5: memref<2x32x64xbf16, #tpu.memory_space<vmem>>, %arg6: memref<2x64x32xbf16, #tpu.memory_space<vmem>>, %arg7: memref<32x8xbf16, #tpu.memory_space<vmem>>, %arg8: memref<20x96xf32, #tpu.memory_space<vmem>>, %arg9: memref<2x4x8xf32, #tpu.memory_space<vmem>>) attributes {dimension_semantics = [#tpu.dimension_semantics<parallel>], iteration_bounds = array<i64: 1>, scalar_prefetch = 0 : i64, scratch_operands = 0 : i64, tpu.core_type = #tpu.core_type<tc>, window_params = [{transform_indices = @transform_0, window_bounds = array<i64: 2, 4, 16>}, {pipeline_mode = #tpu.pipeline_mode<synchronous>, transform_indices = @transform_1, window_bounds = array<i64: 16, 32>}, {pipeline_mode = #tpu.pipeline_mode<synchronous>, transform_indices = @transform_2, window_bounds = array<i64: 2, 32, 96>}, {pipeline_mode = #tpu.pipeline_mode<synchronous>, transform_indices = @transform_3, window_bounds = array<i64: 2, 32, 32>}, {pipeline_mode = #tpu.pipeline_mode<synchronous>, transform_indices = @transform_4, window_bounds = array<i64: 2, 32, 64>}, {pipeline_mode = #tpu.pipeline_mode<synchronous>, transform_indices = @transform_5, window_bounds = array<i64: 2, 64, 32>}, {pipeline_mode = #tpu.pipeline_mode<synchronous>, transform_indices = @transform_6, window_bounds = array<i64: 32, 8>}, {pipeline_mode = #tpu.pipeline_mode<synchronous>, transform_indices = @transform_7, window_bounds = array<i64: 20, 96>}, {transform_indices = @transform_8, window_bounds = array<i64: 2, 4, 8>}]} {
    %c0 = arith.constant 0 : index
    %c0_0 = arith.constant 0 : index
    %c0_1 = arith.constant 0 : index
    %0 = vector.load %arg1[%c0, %c0_0, %c0_1] : memref<2x4x16xf32, #tpu.memory_space<vmem>>, vector<2x4x16xf32>
    %1 = vector.shape_cast %0 : vector<2x4x16xf32> to vector<8x16xf32>
    %cst = arith.constant dense<0.000000e+00> : vector<8xf32>
    %2 = vector.multi_reduction <add>, %1, %cst [1] : vector<8x16xf32> to vector<8xf32>
    %3 = vector.shape_cast %2 : vector<8xf32> to vector<8x1xf32>
    %cst_2 = arith.constant 1.600000e+01 : f32
    %4 = vector.broadcast %cst_2 : f32 to vector<8x1xf32>
    %5 = arith.divf %3, %4 : vector<8x1xf32>
    %6 = vector.broadcast %5 : vector<8x1xf32> to vector<8x16xf32>
    %7 = arith.subf %1, %6 : vector<8x16xf32>
    %8 = arith.mulf %7, %7 : vector<8x16xf32>
    %cst_3 = arith.constant dense<0.000000e+00> : vector<8xf32>
    %9 = vector.multi_reduction <add>, %8, %cst_3 [1] : vector<8x16xf32> to vector<8xf32>
    %10 = vector.shape_cast %9 : vector<8xf32> to vector<8x1xf32>
    %cst_4 = arith.constant 1.600000e+01 : f32
    %11 = vector.broadcast %cst_4 : f32 to vector<8x1xf32>
    %12 = arith.divf %10, %11 : vector<8x1xf32>
    %cst_5 = arith.constant 9.99999974E-6 : f32
    %13 = vector.broadcast %cst_5 : f32 to vector<8x1xf32>
    %14 = arith.addf %12, %13 : vector<8x1xf32>
    %15 = math.sqrt %14 : vector<8x1xf32>
    %16 = vector.broadcast %15 : vector<8x1xf32> to vector<8x16xf32>
    %17 = arith.divf %7, %16 : vector<8x16xf32>
    %c0_6 = arith.constant 0 : index
    %c0_7 = arith.constant 0 : index
    %18 = vector.load %arg8[%c0_6, %c0_7] : memref<20x96xf32, #tpu.memory_space<vmem>>, vector<1x32xf32>
    %c1 = arith.constant 1 : index
    %c0_8 = arith.constant 0 : index
    %19 = vector.load %arg8[%c1, %c0_8] : memref<20x96xf32, #tpu.memory_space<vmem>>, vector<1x32xf32>
    %c2 = arith.constant 2 : index
    %c0_9 = arith.constant 0 : index
    %20 = vector.load %arg8[%c2, %c0_9] : memref<20x96xf32, #tpu.memory_space<vmem>>, vector<1x32xf32>
    %c3 = arith.constant 3 : index
    %c0_10 = arith.constant 0 : index
    %21 = vector.load %arg8[%c3, %c0_10] : memref<20x96xf32, #tpu.memory_space<vmem>>, vector<1x8xf32>
    %c0_11 = arith.constant 0 : index
    %c0_12 = arith.constant 0 : index
    %22 = vector.load %arg2[%c0_11, %c0_12] : memref<16x32xbf16, #tpu.memory_space<vmem>>, vector<16x32xbf16>
    %23 = arith.truncf %17 : vector<8x16xf32> to vector<8x16xbf16>
    %cst_13 = arith.constant dense<0.000000e+00> : vector<8x32xf32>
    %24 = tpu.matmul %23, %22, %cst_13 {dimension_numbers = #tpu.dot_dimension_numbers<[1], [0], [0], [1], [0, 0, 1, 1], [], []>} : vector<8x16xbf16>, vector<16x32xbf16>, vector<8x32xf32> -> vector<8x32xf32>
    %25 = vector.broadcast %18 : vector<1x32xf32> to vector<8x32xf32>
    %26 = arith.addf %24, %25 : vector<8x32xf32>
    %27 = tpu.iota {dimensions = array<i32: 0>} : vector<8x8xi32>
    %28 = arith.sitofp %27 : vector<8x8xi32> to vector<8x8xf32>
    %29 = tpu.iota {dimensions = array<i32: 1>} : vector<8x8xi32>
    %30 = arith.sitofp %29 : vector<8x8xi32> to vector<8x8xf32>
    %cst_14 = arith.constant 5.000000e-01 : f32
    %31 = vector.broadcast %cst_14 : f32 to vector<8x8xf32>
    %32 = arith.addf %28, %31 : vector<8x8xf32>
    %cst_15 = arith.constant 2.500000e-01 : f32
    %33 = vector.broadcast %cst_15 : f32 to vector<8x8xf32>
    %34 = arith.mulf %32, %33 : vector<8x8xf32>
    %35 = math.floor %34 : vector<8x8xf32>
    %cst_16 = arith.constant 5.000000e-01 : f32
    %36 = vector.broadcast %cst_16 : f32 to vector<8x8xf32>
    %37 = arith.addf %30, %36 : vector<8x8xf32>
    %cst_17 = arith.constant 2.500000e-01 : f32
    %38 = vector.broadcast %cst_17 : f32 to vector<8x8xf32>
    %39 = arith.mulf %37, %38 : vector<8x8xf32>
    %40 = math.floor %39 : vector<8x8xf32>
    %41 = arith.cmpf oeq, %35, %40 : vector<8x8xf32>
    %cst_18 = arith.constant 0.000000e+00 : f32
    %cst_19 = arith.constant -1.000000e+30 : f32
    %42 = vector.broadcast %cst_18 : f32 to vector<8x8xf32>
    %43 = vector.broadcast %cst_19 : f32 to vector<8x8xf32>
    %44 = arith.select %41, %42, %43 : vector<8x8xi1>, vector<8x8xf32>
    %c4 = arith.constant 4 : index
    %c0_20 = arith.constant 0 : index
    %45 = vector.load %arg8[%c4, %c0_20] : memref<20x96xf32, #tpu.memory_space<vmem>>, vector<1x96xf32>
    %c5 = arith.constant 5 : index
    %c0_21 = arith.constant 0 : index
    %46 = vector.load %arg8[%c5, %c0_21] : memref<20x96xf32, #tpu.memory_space<vmem>>, vector<1x32xf32>
    %c6 = arith.constant 6 : index
    %c0_22 = arith.constant 0 : index
    %47 = vector.load %arg8[%c6, %c0_22] : memref<20x96xf32, #tpu.memory_space<vmem>>, vector<1x64xf32>
    %c7 = arith.constant 7 : index
    %c0_23 = arith.constant 0 : index
    %48 = vector.load %arg8[%c7, %c0_23] : memref<20x96xf32, #tpu.memory_space<vmem>>, vector<1x32xf32>
    %c8 = arith.constant 8 : index
    %c0_24 = arith.constant 0 : index
    %49 = vector.load %arg8[%c8, %c0_24] : memref<20x96xf32, #tpu.memory_space<vmem>>, vector<1x32xf32>
    %c9 = arith.constant 9 : index
    %c0_25 = arith.constant 0 : index
    %50 = vector.load %arg8[%c9, %c0_25] : memref<20x96xf32, #tpu.memory_space<vmem>>, vector<1x32xf32>
    %c10 = arith.constant 10 : index
    %c0_26 = arith.constant 0 : index
    %51 = vector.load %arg8[%c10, %c0_26] : memref<20x96xf32, #tpu.memory_space<vmem>>, vector<1x32xf32>
    %c11 = arith.constant 11 : index
    %c0_27 = arith.constant 0 : index
    %52 = vector.load %arg8[%c11, %c0_27] : memref<20x96xf32, #tpu.memory_space<vmem>>, vector<1x32xf32>
    %c0_28 = arith.constant 0 : index
    %c0_29 = arith.constant 0 : index
    %c0_30 = arith.constant 0 : index
    %53 = vector.load %arg3[%c0_28, %c0_29, %c0_30] : memref<2x32x96xbf16, #tpu.memory_space<vmem>>, vector<1x32x96xbf16>
    %54 = vector.shape_cast %53 : vector<1x32x96xbf16> to vector<32x96xbf16>
    %55 = arith.truncf %26 : vector<8x32xf32> to vector<8x32xbf16>
    %cst_31 = arith.constant dense<0.000000e+00> : vector<8x96xf32>
    %56 = tpu.matmul %55, %54, %cst_31 {dimension_numbers = #tpu.dot_dimension_numbers<[1], [0], [0], [1], [0, 0, 1, 1], [], []>} : vector<8x32xbf16>, vector<32x96xbf16>, vector<8x96xf32> -> vector<8x96xf32>
    %57 = vector.broadcast %45 : vector<1x96xf32> to vector<8x96xf32>
    %58 = arith.addf %56, %57 : vector<8x96xf32>
    %59 = vector.extract_strided_slice %58 {offsets = [0, 0], sizes = [8, 32], strides = [1, 1]} : vector<8x96xf32> to vector<8x32xf32>
    %cst_32 = arith.constant 0.353553385 : f32
    %60 = vector.broadcast %cst_32 : f32 to vector<8x32xf32>
    %61 = arith.mulf %59, %60 : vector<8x32xf32>
    %62 = vector.extract_strided_slice %58 {offsets = [0, 32], sizes = [8, 32], strides = [1, 1]} : vector<8x96xf32> to vector<8x32xf32>
    %63 = vector.extract_strided_slice %58 {offsets = [0, 64], sizes = [8, 32], strides = [1, 1]} : vector<8x96xf32> to vector<8x32xf32>
    %64 = vector.extract_strided_slice %61 {offsets = [0, 0], sizes = [8, 8], strides = [1, 1]} : vector<8x32xf32> to vector<8x8xf32>
    %65 = vector.extract_strided_slice %62 {offsets = [0, 0], sizes = [8, 8], strides = [1, 1]} : vector<8x32xf32> to vector<8x8xf32>
    %66 = tpu.transpose %65, [1, 0] : vector<8x8xf32> -> vector<8x8xf32>
    %67 = arith.truncf %64 : vector<8x8xf32> to vector<8x8xbf16>
    %68 = arith.truncf %66 : vector<8x8xf32> to vector<8x8xbf16>
    %cst_33 = arith.constant dense<0.000000e+00> : vector<8x8xf32>
    %69 = tpu.matmul %67, %68, %cst_33 {dimension_numbers = #tpu.dot_dimension_numbers<[1], [0], [0], [1], [0, 0, 1, 1], [], []>} : vector<8x8xbf16>, vector<8x8xbf16>, vector<8x8xf32> -> vector<8x8xf32>
    %70 = arith.addf %69, %44 : vector<8x8xf32>
    %cst_34 = arith.constant dense<0xFF800000> : vector<8xf32>
    %71 = vector.multi_reduction <maximumf>, %70, %cst_34 [1] : vector<8x8xf32> to vector<8xf32>
    %72 = vector.shape_cast %71 : vector<8xf32> to vector<8x1xf32>
    %73 = vector.broadcast %72 : vector<8x1xf32> to vector<8x8xf32>
    %74 = arith.subf %70, %73 : vector<8x8xf32>
    %75 = math.exp %74 : vector<8x8xf32>
    %cst_35 = arith.constant dense<0.000000e+00> : vector<8xf32>
    %76 = vector.multi_reduction <add>, %75, %cst_35 [1] : vector<8x8xf32> to vector<8xf32>
    %77 = vector.shape_cast %76 : vector<8xf32> to vector<8x1xf32>
    %78 = vector.broadcast %77 : vector<8x1xf32> to vector<8x8xf32>
    %79 = arith.divf %75, %78 : vector<8x8xf32>
    %80 = vector.extract_strided_slice %63 {offsets = [0, 0], sizes = [8, 8], strides = [1, 1]} : vector<8x32xf32> to vector<8x8xf32>
    %81 = arith.truncf %79 : vector<8x8xf32> to vector<8x8xbf16>
    %82 = arith.truncf %80 : vector<8x8xf32> to vector<8x8xbf16>
    %cst_36 = arith.constant dense<0.000000e+00> : vector<8x8xf32>
    %83 = tpu.matmul %81, %82, %cst_36 {dimension_numbers = #tpu.dot_dimension_numbers<[1], [0], [0], [1], [0, 0, 1, 1], [], []>} : vector<8x8xbf16>, vector<8x8xbf16>, vector<8x8xf32> -> vector<8x8xf32>
    %84 = vector.extract_strided_slice %61 {offsets = [0, 8], sizes = [8, 8], strides = [1, 1]} : vector<8x32xf32> to vector<8x8xf32>
    %85 = vector.extract_strided_slice %62 {offsets = [0, 8], sizes = [8, 8], strides = [1, 1]} : vector<8x32xf32> to vector<8x8xf32>
    %86 = tpu.transpose %85, [1, 0] : vector<8x8xf32> -> vector<8x8xf32>
    %87 = arith.truncf %84 : vector<8x8xf32> to vector<8x8xbf16>
    %88 = arith.truncf %86 : vector<8x8xf32> to vector<8x8xbf16>
    %cst_37 = arith.constant dense<0.000000e+00> : vector<8x8xf32>
    %89 = tpu.matmul %87, %88, %cst_37 {dimension_numbers = #tpu.dot_dimension_numbers<[1], [0], [0], [1], [0, 0, 1, 1], [], []>} : vector<8x8xbf16>, vector<8x8xbf16>, vector<8x8xf32> -> vector<8x8xf32>
    %90 = arith.addf %89, %44 : vector<8x8xf32>
    %cst_38 = arith.constant dense<0xFF800000> : vector<8xf32>
    %91 = vector.multi_reduction <maximumf>, %90, %cst_38 [1] : vector<8x8xf32> to vector<8xf32>
    %92 = vector.shape_cast %91 : vector<8xf32> to vector<8x1xf32>
    %93 = vector.broadcast %92 : vector<8x1xf32> to vector<8x8xf32>
    %94 = arith.subf %90, %93 : vector<8x8xf32>
    %95 = math.exp %94 : vector<8x8xf32>
    %cst_39 = arith.constant dense<0.000000e+00> : vector<8xf32>
    %96 = vector.multi_reduction <add>, %95, %cst_39 [1] : vector<8x8xf32> to vector<8xf32>
    %97 = vector.shape_cast %96 : vector<8xf32> to vector<8x1xf32>
    %98 = vector.broadcast %97 : vector<8x1xf32> to vector<8x8xf32>
    %99 = arith.divf %95, %98 : vector<8x8xf32>
    %100 = vector.extract_strided_slice %63 {offsets = [0, 8], sizes = [8, 8], strides = [1, 1]} : vector<8x32xf32> to vector<8x8xf32>
    %101 = arith.truncf %99 : vector<8x8xf32> to vector<8x8xbf16>
    %102 = arith.truncf %100 : vector<8x8xf32> to vector<8x8xbf16>
    %cst_40 = arith.constant dense<0.000000e+00> : vector<8x8xf32>
    %103 = tpu.matmul %101, %102, %cst_40 {dimension_numbers = #tpu.dot_dimension_numbers<[1], [0], [0], [1], [0, 0, 1, 1], [], []>} : vector<8x8xbf16>, vector<8x8xbf16>, vector<8x8xf32> -> vector<8x8xf32>
    %104 = vector.extract_strided_slice %61 {offsets = [0, 16], sizes = [8, 8], strides = [1, 1]} : vector<8x32xf32> to vector<8x8xf32>
    %105 = vector.extract_strided_slice %62 {offsets = [0, 16], sizes = [8, 8], strides = [1, 1]} : vector<8x32xf32> to vector<8x8xf32>
    %106 = tpu.transpose %105, [1, 0] : vector<8x8xf32> -> vector<8x8xf32>
    %107 = arith.truncf %104 : vector<8x8xf32> to vector<8x8xbf16>
    %108 = arith.truncf %106 : vector<8x8xf32> to vector<8x8xbf16>
    %cst_41 = arith.constant dense<0.000000e+00> : vector<8x8xf32>
    %109 = tpu.matmul %107, %108, %cst_41 {dimension_numbers = #tpu.dot_dimension_numbers<[1], [0], [0], [1], [0, 0, 1, 1], [], []>} : vector<8x8xbf16>, vector<8x8xbf16>, vector<8x8xf32> -> vector<8x8xf32>
    %110 = arith.addf %109, %44 : vector<8x8xf32>
    %cst_42 = arith.constant dense<0xFF800000> : vector<8xf32>
    %111 = vector.multi_reduction <maximumf>, %110, %cst_42 [1] : vector<8x8xf32> to vector<8xf32>
    %112 = vector.shape_cast %111 : vector<8xf32> to vector<8x1xf32>
    %113 = vector.broadcast %112 : vector<8x1xf32> to vector<8x8xf32>
    %114 = arith.subf %110, %113 : vector<8x8xf32>
    %115 = math.exp %114 : vector<8x8xf32>
    %cst_43 = arith.constant dense<0.000000e+00> : vector<8xf32>
    %116 = vector.multi_reduction <add>, %115, %cst_43 [1] : vector<8x8xf32> to vector<8xf32>
    %117 = vector.shape_cast %116 : vector<8xf32> to vector<8x1xf32>
    %118 = vector.broadcast %117 : vector<8x1xf32> to vector<8x8xf32>
    %119 = arith.divf %115, %118 : vector<8x8xf32>
    %120 = vector.extract_strided_slice %63 {offsets = [0, 16], sizes = [8, 8], strides = [1, 1]} : vector<8x32xf32> to vector<8x8xf32>
    %121 = arith.truncf %119 : vector<8x8xf32> to vector<8x8xbf16>
    %122 = arith.truncf %120 : vector<8x8xf32> to vector<8x8xbf16>
    %cst_44 = arith.constant dense<0.000000e+00> : vector<8x8xf32>
    %123 = tpu.matmul %121, %122, %cst_44 {dimension_numbers = #tpu.dot_dimension_numbers<[1], [0], [0], [1], [0, 0, 1, 1], [], []>} : vector<8x8xbf16>, vector<8x8xbf16>, vector<8x8xf32> -> vector<8x8xf32>
    %124 = vector.extract_strided_slice %61 {offsets = [0, 24], sizes = [8, 8], strides = [1, 1]} : vector<8x32xf32> to vector<8x8xf32>
    %125 = vector.extract_strided_slice %62 {offsets = [0, 24], sizes = [8, 8], strides = [1, 1]} : vector<8x32xf32> to vector<8x8xf32>
    %126 = tpu.transpose %125, [1, 0] : vector<8x8xf32> -> vector<8x8xf32>
    %127 = arith.truncf %124 : vector<8x8xf32> to vector<8x8xbf16>
    %128 = arith.truncf %126 : vector<8x8xf32> to vector<8x8xbf16>
    %cst_45 = arith.constant dense<0.000000e+00> : vector<8x8xf32>
    %129 = tpu.matmul %127, %128, %cst_45 {dimension_numbers = #tpu.dot_dimension_numbers<[1], [0], [0], [1], [0, 0, 1, 1], [], []>} : vector<8x8xbf16>, vector<8x8xbf16>, vector<8x8xf32> -> vector<8x8xf32>
    %130 = arith.addf %129, %44 : vector<8x8xf32>
    %cst_46 = arith.constant dense<0xFF800000> : vector<8xf32>
    %131 = vector.multi_reduction <maximumf>, %130, %cst_46 [1] : vector<8x8xf32> to vector<8xf32>
    %132 = vector.shape_cast %131 : vector<8xf32> to vector<8x1xf32>
    %133 = vector.broadcast %132 : vector<8x1xf32> to vector<8x8xf32>
    %134 = arith.subf %130, %133 : vector<8x8xf32>
    %135 = math.exp %134 : vector<8x8xf32>
    %cst_47 = arith.constant dense<0.000000e+00> : vector<8xf32>
    %136 = vector.multi_reduction <add>, %135, %cst_47 [1] : vector<8x8xf32> to vector<8xf32>
    %137 = vector.shape_cast %136 : vector<8xf32> to vector<8x1xf32>
    %138 = vector.broadcast %137 : vector<8x1xf32> to vector<8x8xf32>
    %139 = arith.divf %135, %138 : vector<8x8xf32>
    %140 = vector.extract_strided_slice %63 {offsets = [0, 24], sizes = [8, 8], strides = [1, 1]} : vector<8x32xf32> to vector<8x8xf32>
    %141 = arith.truncf %139 : vector<8x8xf32> to vector<8x8xbf16>
    %142 = arith.truncf %140 : vector<8x8xf32> to vector<8x8xbf16>
    %cst_48 = arith.constant dense<0.000000e+00> : vector<8x8xf32>
    %143 = tpu.matmul %141, %142, %cst_48 {dimension_numbers = #tpu.dot_dimension_numbers<[1], [0], [0], [1], [0, 0, 1, 1], [], []>} : vector<8x8xbf16>, vector<8x8xbf16>, vector<8x8xf32> -> vector<8x8xf32>
    %144 = tpu.concatenate %83, %103, %123, %143 in 1 : vector<8x8xf32>, vector<8x8xf32>, vector<8x8xf32>, vector<8x8xf32> -> vector<8x32xf32>
    %c0_49 = arith.constant 0 : index
    %c0_50 = arith.constant 0 : index
    %c0_51 = arith.constant 0 : index
    %145 = vector.load %arg4[%c0_49, %c0_50, %c0_51] : memref<2x32x32xbf16, #tpu.memory_space<vmem>>, vector<1x32x32xbf16>
    %146 = vector.shape_cast %145 : vector<1x32x32xbf16> to vector<32x32xbf16>
    %147 = arith.truncf %144 : vector<8x32xf32> to vector<8x32xbf16>
    %cst_52 = arith.constant dense<0.000000e+00> : vector<8x32xf32>
    %148 = tpu.matmul %147, %146, %cst_52 {dimension_numbers = #tpu.dot_dimension_numbers<[1], [0], [0], [1], [0, 0, 1, 1], [], []>} : vector<8x32xbf16>, vector<32x32xbf16>, vector<8x32xf32> -> vector<8x32xf32>
    %149 = vector.broadcast %46 : vector<1x32xf32> to vector<8x32xf32>
    %150 = arith.addf %148, %149 : vector<8x32xf32>
    %151 = arith.addf %26, %150 : vector<8x32xf32>
    %cst_53 = arith.constant dense<0.000000e+00> : vector<8xf32>
    %152 = vector.multi_reduction <add>, %151, %cst_53 [1] : vector<8x32xf32> to vector<8xf32>
    %153 = vector.shape_cast %152 : vector<8xf32> to vector<8x1xf32>
    %cst_54 = arith.constant 3.200000e+01 : f32
    %154 = vector.broadcast %cst_54 : f32 to vector<8x1xf32>
    %155 = arith.divf %153, %154 : vector<8x1xf32>
    %156 = vector.broadcast %155 : vector<8x1xf32> to vector<8x32xf32>
    %157 = arith.subf %151, %156 : vector<8x32xf32>
    %158 = arith.mulf %157, %157 : vector<8x32xf32>
    %cst_55 = arith.constant dense<0.000000e+00> : vector<8xf32>
    %159 = vector.multi_reduction <add>, %158, %cst_55 [1] : vector<8x32xf32> to vector<8xf32>
    %160 = vector.shape_cast %159 : vector<8xf32> to vector<8x1xf32>
    %cst_56 = arith.constant 3.200000e+01 : f32
    %161 = vector.broadcast %cst_56 : f32 to vector<8x1xf32>
    %162 = arith.divf %160, %161 : vector<8x1xf32>
    %cst_57 = arith.constant 9.99999974E-6 : f32
    %163 = vector.broadcast %cst_57 : f32 to vector<8x1xf32>
    %164 = arith.addf %162, %163 : vector<8x1xf32>
    %165 = math.rsqrt %164 : vector<8x1xf32>
    %166 = vector.broadcast %165 : vector<8x1xf32> to vector<8x32xf32>
    %167 = arith.mulf %157, %166 : vector<8x32xf32>
    %168 = vector.broadcast %49 : vector<1x32xf32> to vector<8x32xf32>
    %169 = arith.mulf %167, %168 : vector<8x32xf32>
    %170 = vector.broadcast %50 : vector<1x32xf32> to vector<8x32xf32>
    %171 = arith.addf %169, %170 : vector<8x32xf32>
    %c0_58 = arith.constant 0 : index
    %c0_59 = arith.constant 0 : index
    %c0_60 = arith.constant 0 : index
    %172 = vector.load %arg5[%c0_58, %c0_59, %c0_60] : memref<2x32x64xbf16, #tpu.memory_space<vmem>>, vector<1x32x64xbf16>
    %173 = vector.shape_cast %172 : vector<1x32x64xbf16> to vector<32x64xbf16>
    %174 = arith.truncf %171 : vector<8x32xf32> to vector<8x32xbf16>
    %cst_61 = arith.constant dense<0.000000e+00> : vector<8x64xf32>
    %175 = tpu.matmul %174, %173, %cst_61 {dimension_numbers = #tpu.dot_dimension_numbers<[1], [0], [0], [1], [0, 0, 1, 1], [], []>} : vector<8x32xbf16>, vector<32x64xbf16>, vector<8x64xf32> -> vector<8x64xf32>
    %176 = vector.broadcast %47 : vector<1x64xf32> to vector<8x64xf32>
    %177 = arith.addf %175, %176 : vector<8x64xf32>
    %cst_62 = arith.constant 0.707106769 : f32
    %178 = vector.broadcast %cst_62 : f32 to vector<8x64xf32>
    %179 = arith.mulf %177, %178 : vector<8x64xf32>
    %180 = math.absf %179 : vector<8x64xf32>
    %cst_63 = arith.constant 0.327591091 : f32
    %181 = vector.broadcast %cst_63 : f32 to vector<8x64xf32>
    %182 = arith.mulf %181, %180 : vector<8x64xf32>
    %cst_64 = arith.constant 1.000000e+00 : f32
    %183 = vector.broadcast %cst_64 : f32 to vector<8x64xf32>
    %184 = arith.addf %183, %182 : vector<8x64xf32>
    %cst_65 = arith.constant 1.000000e+00 : f32
    %185 = vector.broadcast %cst_65 : f32 to vector<8x64xf32>
    %186 = arith.divf %185, %184 : vector<8x64xf32>
    %cst_66 = arith.constant 1.06140542 : f32
    %187 = vector.broadcast %cst_66 : f32 to vector<8x64xf32>
    %188 = arith.mulf %186, %187 : vector<8x64xf32>
    %cst_67 = arith.constant -1.45315206 : f32
    %189 = vector.broadcast %cst_67 : f32 to vector<8x64xf32>
    %190 = arith.addf %189, %188 : vector<8x64xf32>
    %191 = arith.mulf %186, %190 : vector<8x64xf32>
    %cst_68 = arith.constant 1.42141378 : f32
    %192 = vector.broadcast %cst_68 : f32 to vector<8x64xf32>
    %193 = arith.addf %192, %191 : vector<8x64xf32>
    %194 = arith.mulf %186, %193 : vector<8x64xf32>
    %cst_69 = arith.constant -0.284496725 : f32
    %195 = vector.broadcast %cst_69 : f32 to vector<8x64xf32>
    %196 = arith.addf %195, %194 : vector<8x64xf32>
    %197 = arith.mulf %186, %196 : vector<8x64xf32>
    %cst_70 = arith.constant 0.254829586 : f32
    %198 = vector.broadcast %cst_70 : f32 to vector<8x64xf32>
    %199 = arith.addf %198, %197 : vector<8x64xf32>
    %200 = arith.mulf %186, %199 : vector<8x64xf32>
    %cst_71 = arith.constant 0.000000e+00 : f32
    %201 = vector.broadcast %cst_71 : f32 to vector<8x64xf32>
    %202 = arith.subf %201, %180 : vector<8x64xf32>
    %203 = arith.mulf %202, %180 : vector<8x64xf32>
    %204 = math.exp %203 : vector<8x64xf32>
    %205 = arith.mulf %200, %204 : vector<8x64xf32>
    %cst_72 = arith.constant 1.000000e+00 : f32
    %206 = vector.broadcast %cst_72 : f32 to vector<8x64xf32>
    %207 = arith.subf %206, %205 : vector<8x64xf32>
    %cst_73 = arith.constant 0.000000e+00 : f32
    %208 = vector.broadcast %cst_73 : f32 to vector<8x64xf32>
    %209 = arith.cmpf olt, %179, %208 : vector<8x64xf32>
    %cst_74 = arith.constant 0.000000e+00 : f32
    %210 = vector.broadcast %cst_74 : f32 to vector<8x64xf32>
    %211 = arith.subf %210, %207 : vector<8x64xf32>
    %212 = arith.select %209, %211, %207 : vector<8x64xi1>, vector<8x64xf32>
    %cst_75 = arith.constant 5.000000e-01 : f32
    %213 = vector.broadcast %cst_75 : f32 to vector<8x64xf32>
    %214 = arith.mulf %213, %177 : vector<8x64xf32>
    %cst_76 = arith.constant 1.000000e+00 : f32
    %215 = vector.broadcast %cst_76 : f32 to vector<8x64xf32>
    %216 = arith.addf %215, %212 : vector<8x64xf32>
    %217 = arith.mulf %214, %216 : vector<8x64xf32>
    %c0_77 = arith.constant 0 : index
    %c0_78 = arith.constant 0 : index
    %c0_79 = arith.constant 0 : index
    %218 = vector.load %arg6[%c0_77, %c0_78, %c0_79] : memref<2x64x32xbf16, #tpu.memory_space<vmem>>, vector<1x64x32xbf16>
    %219 = vector.shape_cast %218 : vector<1x64x32xbf16> to vector<64x32xbf16>
    %220 = arith.truncf %217 : vector<8x64xf32> to vector<8x64xbf16>
    %cst_80 = arith.constant dense<0.000000e+00> : vector<8x32xf32>
    %221 = tpu.matmul %220, %219, %cst_80 {dimension_numbers = #tpu.dot_dimension_numbers<[1], [0], [0], [1], [0, 0, 1, 1], [], []>} : vector<8x64xbf16>, vector<64x32xbf16>, vector<8x32xf32> -> vector<8x32xf32>
    %222 = vector.broadcast %48 : vector<1x32xf32> to vector<8x32xf32>
    %223 = arith.addf %221, %222 : vector<8x32xf32>
    %224 = arith.addf %171, %223 : vector<8x32xf32>
    %cst_81 = arith.constant dense<0.000000e+00> : vector<8xf32>
    %225 = vector.multi_reduction <add>, %224, %cst_81 [1] : vector<8x32xf32> to vector<8xf32>
    %226 = vector.shape_cast %225 : vector<8xf32> to vector<8x1xf32>
    %cst_82 = arith.constant 3.200000e+01 : f32
    %227 = vector.broadcast %cst_82 : f32 to vector<8x1xf32>
    %228 = arith.divf %226, %227 : vector<8x1xf32>
    %229 = vector.broadcast %228 : vector<8x1xf32> to vector<8x32xf32>
    %230 = arith.subf %224, %229 : vector<8x32xf32>
    %231 = arith.mulf %230, %230 : vector<8x32xf32>
    %cst_83 = arith.constant dense<0.000000e+00> : vector<8xf32>
    %232 = vector.multi_reduction <add>, %231, %cst_83 [1] : vector<8x32xf32> to vector<8xf32>
    %233 = vector.shape_cast %232 : vector<8xf32> to vector<8x1xf32>
    %cst_84 = arith.constant 3.200000e+01 : f32
    %234 = vector.broadcast %cst_84 : f32 to vector<8x1xf32>
    %235 = arith.divf %233, %234 : vector<8x1xf32>
    %cst_85 = arith.constant 9.99999974E-6 : f32
    %236 = vector.broadcast %cst_85 : f32 to vector<8x1xf32>
    %237 = arith.addf %235, %236 : vector<8x1xf32>
    %238 = math.rsqrt %237 : vector<8x1xf32>
    %239 = vector.broadcast %238 : vector<8x1xf32> to vector<8x32xf32>
    %240 = arith.mulf %230, %239 : vector<8x32xf32>
    %241 = vector.broadcast %51 : vector<1x32xf32> to vector<8x32xf32>
    %242 = arith.mulf %240, %241 : vector<8x32xf32>
    %243 = vector.broadcast %52 : vector<1x32xf32> to vector<8x32xf32>
    %244 = arith.addf %242, %243 : vector<8x32xf32>
    %c12 = arith.constant 12 : index
    %c0_86 = arith.constant 0 : index
    %245 = vector.load %arg8[%c12, %c0_86] : memref<20x96xf32, #tpu.memory_space<vmem>>, vector<1x96xf32>
    %c13 = arith.constant 13 : index
    %c0_87 = arith.constant 0 : index
    %246 = vector.load %arg8[%c13, %c0_87] : memref<20x96xf32, #tpu.memory_space<vmem>>, vector<1x32xf32>
    %c14 = arith.constant 14 : index
    %c0_88 = arith.constant 0 : index
    %247 = vector.load %arg8[%c14, %c0_88] : memref<20x96xf32, #tpu.memory_space<vmem>>, vector<1x64xf32>
    %c15 = arith.constant 15 : index
    %c0_89 = arith.constant 0 : index
    %248 = vector.load %arg8[%c15, %c0_89] : memref<20x96xf32, #tpu.memory_space<vmem>>, vector<1x32xf32>
    %c16 = arith.constant 16 : index
    %c0_90 = arith.constant 0 : index
    %249 = vector.load %arg8[%c16, %c0_90] : memref<20x96xf32, #tpu.memory_space<vmem>>, vector<1x32xf32>
    %c17 = arith.constant 17 : index
    %c0_91 = arith.constant 0 : index
    %250 = vector.load %arg8[%c17, %c0_91] : memref<20x96xf32, #tpu.memory_space<vmem>>, vector<1x32xf32>
    %c18 = arith.constant 18 : index
    %c0_92 = arith.constant 0 : index
    %251 = vector.load %arg8[%c18, %c0_92] : memref<20x96xf32, #tpu.memory_space<vmem>>, vector<1x32xf32>
    %c19 = arith.constant 19 : index
    %c0_93 = arith.constant 0 : index
    %252 = vector.load %arg8[%c19, %c0_93] : memref<20x96xf32, #tpu.memory_space<vmem>>, vector<1x32xf32>
    %c1_94 = arith.constant 1 : index
    %c0_95 = arith.constant 0 : index
    %c0_96 = arith.constant 0 : index
    %253 = vector.load %arg3[%c1_94, %c0_95, %c0_96] : memref<2x32x96xbf16, #tpu.memory_space<vmem>>, vector<1x32x96xbf16>
    %254 = vector.shape_cast %253 : vector<1x32x96xbf16> to vector<32x96xbf16>
    %255 = arith.truncf %244 : vector<8x32xf32> to vector<8x32xbf16>
    %cst_97 = arith.constant dense<0.000000e+00> : vector<8x96xf32>
    %256 = tpu.matmul %255, %254, %cst_97 {dimension_numbers = #tpu.dot_dimension_numbers<[1], [0], [0], [1], [0, 0, 1, 1], [], []>} : vector<8x32xbf16>, vector<32x96xbf16>, vector<8x96xf32> -> vector<8x96xf32>
    %257 = vector.broadcast %245 : vector<1x96xf32> to vector<8x96xf32>
    %258 = arith.addf %256, %257 : vector<8x96xf32>
    %259 = vector.extract_strided_slice %258 {offsets = [0, 0], sizes = [8, 32], strides = [1, 1]} : vector<8x96xf32> to vector<8x32xf32>
    %cst_98 = arith.constant 0.353553385 : f32
    %260 = vector.broadcast %cst_98 : f32 to vector<8x32xf32>
    %261 = arith.mulf %259, %260 : vector<8x32xf32>
    %262 = vector.extract_strided_slice %258 {offsets = [0, 32], sizes = [8, 32], strides = [1, 1]} : vector<8x96xf32> to vector<8x32xf32>
    %263 = vector.extract_strided_slice %258 {offsets = [0, 64], sizes = [8, 32], strides = [1, 1]} : vector<8x96xf32> to vector<8x32xf32>
    %264 = vector.extract_strided_slice %261 {offsets = [0, 0], sizes = [8, 8], strides = [1, 1]} : vector<8x32xf32> to vector<8x8xf32>
    %265 = vector.extract_strided_slice %262 {offsets = [0, 0], sizes = [8, 8], strides = [1, 1]} : vector<8x32xf32> to vector<8x8xf32>
    %266 = tpu.transpose %265, [1, 0] : vector<8x8xf32> -> vector<8x8xf32>
    %267 = arith.truncf %264 : vector<8x8xf32> to vector<8x8xbf16>
    %268 = arith.truncf %266 : vector<8x8xf32> to vector<8x8xbf16>
    %cst_99 = arith.constant dense<0.000000e+00> : vector<8x8xf32>
    %269 = tpu.matmul %267, %268, %cst_99 {dimension_numbers = #tpu.dot_dimension_numbers<[1], [0], [0], [1], [0, 0, 1, 1], [], []>} : vector<8x8xbf16>, vector<8x8xbf16>, vector<8x8xf32> -> vector<8x8xf32>
    %270 = arith.addf %269, %44 : vector<8x8xf32>
    %cst_100 = arith.constant dense<0xFF800000> : vector<8xf32>
    %271 = vector.multi_reduction <maximumf>, %270, %cst_100 [1] : vector<8x8xf32> to vector<8xf32>
    %272 = vector.shape_cast %271 : vector<8xf32> to vector<8x1xf32>
    %273 = vector.broadcast %272 : vector<8x1xf32> to vector<8x8xf32>
    %274 = arith.subf %270, %273 : vector<8x8xf32>
    %275 = math.exp %274 : vector<8x8xf32>
    %cst_101 = arith.constant dense<0.000000e+00> : vector<8xf32>
    %276 = vector.multi_reduction <add>, %275, %cst_101 [1] : vector<8x8xf32> to vector<8xf32>
    %277 = vector.shape_cast %276 : vector<8xf32> to vector<8x1xf32>
    %278 = vector.broadcast %277 : vector<8x1xf32> to vector<8x8xf32>
    %279 = arith.divf %275, %278 : vector<8x8xf32>
    %280 = vector.extract_strided_slice %263 {offsets = [0, 0], sizes = [8, 8], strides = [1, 1]} : vector<8x32xf32> to vector<8x8xf32>
    %281 = arith.truncf %279 : vector<8x8xf32> to vector<8x8xbf16>
    %282 = arith.truncf %280 : vector<8x8xf32> to vector<8x8xbf16>
    %cst_102 = arith.constant dense<0.000000e+00> : vector<8x8xf32>
    %283 = tpu.matmul %281, %282, %cst_102 {dimension_numbers = #tpu.dot_dimension_numbers<[1], [0], [0], [1], [0, 0, 1, 1], [], []>} : vector<8x8xbf16>, vector<8x8xbf16>, vector<8x8xf32> -> vector<8x8xf32>
    %284 = vector.extract_strided_slice %261 {offsets = [0, 8], sizes = [8, 8], strides = [1, 1]} : vector<8x32xf32> to vector<8x8xf32>
    %285 = vector.extract_strided_slice %262 {offsets = [0, 8], sizes = [8, 8], strides = [1, 1]} : vector<8x32xf32> to vector<8x8xf32>
    %286 = tpu.transpose %285, [1, 0] : vector<8x8xf32> -> vector<8x8xf32>
    %287 = arith.truncf %284 : vector<8x8xf32> to vector<8x8xbf16>
    %288 = arith.truncf %286 : vector<8x8xf32> to vector<8x8xbf16>
    %cst_103 = arith.constant dense<0.000000e+00> : vector<8x8xf32>
    %289 = tpu.matmul %287, %288, %cst_103 {dimension_numbers = #tpu.dot_dimension_numbers<[1], [0], [0], [1], [0, 0, 1, 1], [], []>} : vector<8x8xbf16>, vector<8x8xbf16>, vector<8x8xf32> -> vector<8x8xf32>
    %290 = arith.addf %289, %44 : vector<8x8xf32>
    %cst_104 = arith.constant dense<0xFF800000> : vector<8xf32>
    %291 = vector.multi_reduction <maximumf>, %290, %cst_104 [1] : vector<8x8xf32> to vector<8xf32>
    %292 = vector.shape_cast %291 : vector<8xf32> to vector<8x1xf32>
    %293 = vector.broadcast %292 : vector<8x1xf32> to vector<8x8xf32>
    %294 = arith.subf %290, %293 : vector<8x8xf32>
    %295 = math.exp %294 : vector<8x8xf32>
    %cst_105 = arith.constant dense<0.000000e+00> : vector<8xf32>
    %296 = vector.multi_reduction <add>, %295, %cst_105 [1] : vector<8x8xf32> to vector<8xf32>
    %297 = vector.shape_cast %296 : vector<8xf32> to vector<8x1xf32>
    %298 = vector.broadcast %297 : vector<8x1xf32> to vector<8x8xf32>
    %299 = arith.divf %295, %298 : vector<8x8xf32>
    %300 = vector.extract_strided_slice %263 {offsets = [0, 8], sizes = [8, 8], strides = [1, 1]} : vector<8x32xf32> to vector<8x8xf32>
    %301 = arith.truncf %299 : vector<8x8xf32> to vector<8x8xbf16>
    %302 = arith.truncf %300 : vector<8x8xf32> to vector<8x8xbf16>
    %cst_106 = arith.constant dense<0.000000e+00> : vector<8x8xf32>
    %303 = tpu.matmul %301, %302, %cst_106 {dimension_numbers = #tpu.dot_dimension_numbers<[1], [0], [0], [1], [0, 0, 1, 1], [], []>} : vector<8x8xbf16>, vector<8x8xbf16>, vector<8x8xf32> -> vector<8x8xf32>
    %304 = vector.extract_strided_slice %261 {offsets = [0, 16], sizes = [8, 8], strides = [1, 1]} : vector<8x32xf32> to vector<8x8xf32>
    %305 = vector.extract_strided_slice %262 {offsets = [0, 16], sizes = [8, 8], strides = [1, 1]} : vector<8x32xf32> to vector<8x8xf32>
    %306 = tpu.transpose %305, [1, 0] : vector<8x8xf32> -> vector<8x8xf32>
    %307 = arith.truncf %304 : vector<8x8xf32> to vector<8x8xbf16>
    %308 = arith.truncf %306 : vector<8x8xf32> to vector<8x8xbf16>
    %cst_107 = arith.constant dense<0.000000e+00> : vector<8x8xf32>
    %309 = tpu.matmul %307, %308, %cst_107 {dimension_numbers = #tpu.dot_dimension_numbers<[1], [0], [0], [1], [0, 0, 1, 1], [], []>} : vector<8x8xbf16>, vector<8x8xbf16>, vector<8x8xf32> -> vector<8x8xf32>
    %310 = arith.addf %309, %44 : vector<8x8xf32>
    %cst_108 = arith.constant dense<0xFF800000> : vector<8xf32>
    %311 = vector.multi_reduction <maximumf>, %310, %cst_108 [1] : vector<8x8xf32> to vector<8xf32>
    %312 = vector.shape_cast %311 : vector<8xf32> to vector<8x1xf32>
    %313 = vector.broadcast %312 : vector<8x1xf32> to vector<8x8xf32>
    %314 = arith.subf %310, %313 : vector<8x8xf32>
    %315 = math.exp %314 : vector<8x8xf32>
    %cst_109 = arith.constant dense<0.000000e+00> : vector<8xf32>
    %316 = vector.multi_reduction <add>, %315, %cst_109 [1] : vector<8x8xf32> to vector<8xf32>
    %317 = vector.shape_cast %316 : vector<8xf32> to vector<8x1xf32>
    %318 = vector.broadcast %317 : vector<8x1xf32> to vector<8x8xf32>
    %319 = arith.divf %315, %318 : vector<8x8xf32>
    %320 = vector.extract_strided_slice %263 {offsets = [0, 16], sizes = [8, 8], strides = [1, 1]} : vector<8x32xf32> to vector<8x8xf32>
    %321 = arith.truncf %319 : vector<8x8xf32> to vector<8x8xbf16>
    %322 = arith.truncf %320 : vector<8x8xf32> to vector<8x8xbf16>
    %cst_110 = arith.constant dense<0.000000e+00> : vector<8x8xf32>
    %323 = tpu.matmul %321, %322, %cst_110 {dimension_numbers = #tpu.dot_dimension_numbers<[1], [0], [0], [1], [0, 0, 1, 1], [], []>} : vector<8x8xbf16>, vector<8x8xbf16>, vector<8x8xf32> -> vector<8x8xf32>
    %324 = vector.extract_strided_slice %261 {offsets = [0, 24], sizes = [8, 8], strides = [1, 1]} : vector<8x32xf32> to vector<8x8xf32>
    %325 = vector.extract_strided_slice %262 {offsets = [0, 24], sizes = [8, 8], strides = [1, 1]} : vector<8x32xf32> to vector<8x8xf32>
    %326 = tpu.transpose %325, [1, 0] : vector<8x8xf32> -> vector<8x8xf32>
    %327 = arith.truncf %324 : vector<8x8xf32> to vector<8x8xbf16>
    %328 = arith.truncf %326 : vector<8x8xf32> to vector<8x8xbf16>
    %cst_111 = arith.constant dense<0.000000e+00> : vector<8x8xf32>
    %329 = tpu.matmul %327, %328, %cst_111 {dimension_numbers = #tpu.dot_dimension_numbers<[1], [0], [0], [1], [0, 0, 1, 1], [], []>} : vector<8x8xbf16>, vector<8x8xbf16>, vector<8x8xf32> -> vector<8x8xf32>
    %330 = arith.addf %329, %44 : vector<8x8xf32>
    %cst_112 = arith.constant dense<0xFF800000> : vector<8xf32>
    %331 = vector.multi_reduction <maximumf>, %330, %cst_112 [1] : vector<8x8xf32> to vector<8xf32>
    %332 = vector.shape_cast %331 : vector<8xf32> to vector<8x1xf32>
    %333 = vector.broadcast %332 : vector<8x1xf32> to vector<8x8xf32>
    %334 = arith.subf %330, %333 : vector<8x8xf32>
    %335 = math.exp %334 : vector<8x8xf32>
    %cst_113 = arith.constant dense<0.000000e+00> : vector<8xf32>
    %336 = vector.multi_reduction <add>, %335, %cst_113 [1] : vector<8x8xf32> to vector<8xf32>
    %337 = vector.shape_cast %336 : vector<8xf32> to vector<8x1xf32>
    %338 = vector.broadcast %337 : vector<8x1xf32> to vector<8x8xf32>
    %339 = arith.divf %335, %338 : vector<8x8xf32>
    %340 = vector.extract_strided_slice %263 {offsets = [0, 24], sizes = [8, 8], strides = [1, 1]} : vector<8x32xf32> to vector<8x8xf32>
    %341 = arith.truncf %339 : vector<8x8xf32> to vector<8x8xbf16>
    %342 = arith.truncf %340 : vector<8x8xf32> to vector<8x8xbf16>
    %cst_114 = arith.constant dense<0.000000e+00> : vector<8x8xf32>
    %343 = tpu.matmul %341, %342, %cst_114 {dimension_numbers = #tpu.dot_dimension_numbers<[1], [0], [0], [1], [0, 0, 1, 1], [], []>} : vector<8x8xbf16>, vector<8x8xbf16>, vector<8x8xf32> -> vector<8x8xf32>
    %344 = tpu.concatenate %283, %303, %323, %343 in 1 : vector<8x8xf32>, vector<8x8xf32>, vector<8x8xf32>, vector<8x8xf32> -> vector<8x32xf32>
    %c1_115 = arith.constant 1 : index
    %c0_116 = arith.constant 0 : index
    %c0_117 = arith.constant 0 : index
    %345 = vector.load %arg4[%c1_115, %c0_116, %c0_117] : memref<2x32x32xbf16, #tpu.memory_space<vmem>>, vector<1x32x32xbf16>
    %346 = vector.shape_cast %345 : vector<1x32x32xbf16> to vector<32x32xbf16>
    %347 = arith.truncf %344 : vector<8x32xf32> to vector<8x32xbf16>
    %cst_118 = arith.constant dense<0.000000e+00> : vector<8x32xf32>
    %348 = tpu.matmul %347, %346, %cst_118 {dimension_numbers = #tpu.dot_dimension_numbers<[1], [0], [0], [1], [0, 0, 1, 1], [], []>} : vector<8x32xbf16>, vector<32x32xbf16>, vector<8x32xf32> -> vector<8x32xf32>
    %349 = vector.broadcast %246 : vector<1x32xf32> to vector<8x32xf32>
    %350 = arith.addf %348, %349 : vector<8x32xf32>
    %351 = arith.addf %244, %350 : vector<8x32xf32>
    %cst_119 = arith.constant dense<0.000000e+00> : vector<8xf32>
    %352 = vector.multi_reduction <add>, %351, %cst_119 [1] : vector<8x32xf32> to vector<8xf32>
    %353 = vector.shape_cast %352 : vector<8xf32> to vector<8x1xf32>
    %cst_120 = arith.constant 3.200000e+01 : f32
    %354 = vector.broadcast %cst_120 : f32 to vector<8x1xf32>
    %355 = arith.divf %353, %354 : vector<8x1xf32>
    %356 = vector.broadcast %355 : vector<8x1xf32> to vector<8x32xf32>
    %357 = arith.subf %351, %356 : vector<8x32xf32>
    %358 = arith.mulf %357, %357 : vector<8x32xf32>
    %cst_121 = arith.constant dense<0.000000e+00> : vector<8xf32>
    %359 = vector.multi_reduction <add>, %358, %cst_121 [1] : vector<8x32xf32> to vector<8xf32>
    %360 = vector.shape_cast %359 : vector<8xf32> to vector<8x1xf32>
    %cst_122 = arith.constant 3.200000e+01 : f32
    %361 = vector.broadcast %cst_122 : f32 to vector<8x1xf32>
    %362 = arith.divf %360, %361 : vector<8x1xf32>
    %cst_123 = arith.constant 9.99999974E-6 : f32
    %363 = vector.broadcast %cst_123 : f32 to vector<8x1xf32>
    %364 = arith.addf %362, %363 : vector<8x1xf32>
    %365 = math.rsqrt %364 : vector<8x1xf32>
    %366 = vector.broadcast %365 : vector<8x1xf32> to vector<8x32xf32>
    %367 = arith.mulf %357, %366 : vector<8x32xf32>
    %368 = vector.broadcast %249 : vector<1x32xf32> to vector<8x32xf32>
    %369 = arith.mulf %367, %368 : vector<8x32xf32>
    %370 = vector.broadcast %250 : vector<1x32xf32> to vector<8x32xf32>
    %371 = arith.addf %369, %370 : vector<8x32xf32>
    %c1_124 = arith.constant 1 : index
    %c0_125 = arith.constant 0 : index
    %c0_126 = arith.constant 0 : index
    %372 = vector.load %arg5[%c1_124, %c0_125, %c0_126] : memref<2x32x64xbf16, #tpu.memory_space<vmem>>, vector<1x32x64xbf16>
    %373 = vector.shape_cast %372 : vector<1x32x64xbf16> to vector<32x64xbf16>
    %374 = arith.truncf %371 : vector<8x32xf32> to vector<8x32xbf16>
    %cst_127 = arith.constant dense<0.000000e+00> : vector<8x64xf32>
    %375 = tpu.matmul %374, %373, %cst_127 {dimension_numbers = #tpu.dot_dimension_numbers<[1], [0], [0], [1], [0, 0, 1, 1], [], []>} : vector<8x32xbf16>, vector<32x64xbf16>, vector<8x64xf32> -> vector<8x64xf32>
    %376 = vector.broadcast %247 : vector<1x64xf32> to vector<8x64xf32>
    %377 = arith.addf %375, %376 : vector<8x64xf32>
    %cst_128 = arith.constant 0.707106769 : f32
    %378 = vector.broadcast %cst_128 : f32 to vector<8x64xf32>
    %379 = arith.mulf %377, %378 : vector<8x64xf32>
    %380 = math.absf %379 : vector<8x64xf32>
    %cst_129 = arith.constant 0.327591091 : f32
    %381 = vector.broadcast %cst_129 : f32 to vector<8x64xf32>
    %382 = arith.mulf %381, %380 : vector<8x64xf32>
    %cst_130 = arith.constant 1.000000e+00 : f32
    %383 = vector.broadcast %cst_130 : f32 to vector<8x64xf32>
    %384 = arith.addf %383, %382 : vector<8x64xf32>
    %cst_131 = arith.constant 1.000000e+00 : f32
    %385 = vector.broadcast %cst_131 : f32 to vector<8x64xf32>
    %386 = arith.divf %385, %384 : vector<8x64xf32>
    %cst_132 = arith.constant 1.06140542 : f32
    %387 = vector.broadcast %cst_132 : f32 to vector<8x64xf32>
    %388 = arith.mulf %386, %387 : vector<8x64xf32>
    %cst_133 = arith.constant -1.45315206 : f32
    %389 = vector.broadcast %cst_133 : f32 to vector<8x64xf32>
    %390 = arith.addf %389, %388 : vector<8x64xf32>
    %391 = arith.mulf %386, %390 : vector<8x64xf32>
    %cst_134 = arith.constant 1.42141378 : f32
    %392 = vector.broadcast %cst_134 : f32 to vector<8x64xf32>
    %393 = arith.addf %392, %391 : vector<8x64xf32>
    %394 = arith.mulf %386, %393 : vector<8x64xf32>
    %cst_135 = arith.constant -0.284496725 : f32
    %395 = vector.broadcast %cst_135 : f32 to vector<8x64xf32>
    %396 = arith.addf %395, %394 : vector<8x64xf32>
    %397 = arith.mulf %386, %396 : vector<8x64xf32>
    %cst_136 = arith.constant 0.254829586 : f32
    %398 = vector.broadcast %cst_136 : f32 to vector<8x64xf32>
    %399 = arith.addf %398, %397 : vector<8x64xf32>
    %400 = arith.mulf %386, %399 : vector<8x64xf32>
    %cst_137 = arith.constant 0.000000e+00 : f32
    %401 = vector.broadcast %cst_137 : f32 to vector<8x64xf32>
    %402 = arith.subf %401, %380 : vector<8x64xf32>
    %403 = arith.mulf %402, %380 : vector<8x64xf32>
    %404 = math.exp %403 : vector<8x64xf32>
    %405 = arith.mulf %400, %404 : vector<8x64xf32>
    %cst_138 = arith.constant 1.000000e+00 : f32
    %406 = vector.broadcast %cst_138 : f32 to vector<8x64xf32>
    %407 = arith.subf %406, %405 : vector<8x64xf32>
    %cst_139 = arith.constant 0.000000e+00 : f32
    %408 = vector.broadcast %cst_139 : f32 to vector<8x64xf32>
    %409 = arith.cmpf olt, %379, %408 : vector<8x64xf32>
    %cst_140 = arith.constant 0.000000e+00 : f32
    %410 = vector.broadcast %cst_140 : f32 to vector<8x64xf32>
    %411 = arith.subf %410, %407 : vector<8x64xf32>
    %412 = arith.select %409, %411, %407 : vector<8x64xi1>, vector<8x64xf32>
    %cst_141 = arith.constant 5.000000e-01 : f32
    %413 = vector.broadcast %cst_141 : f32 to vector<8x64xf32>
    %414 = arith.mulf %413, %377 : vector<8x64xf32>
    %cst_142 = arith.constant 1.000000e+00 : f32
    %415 = vector.broadcast %cst_142 : f32 to vector<8x64xf32>
    %416 = arith.addf %415, %412 : vector<8x64xf32>
    %417 = arith.mulf %414, %416 : vector<8x64xf32>
    %c1_143 = arith.constant 1 : index
    %c0_144 = arith.constant 0 : index
    %c0_145 = arith.constant 0 : index
    %418 = vector.load %arg6[%c1_143, %c0_144, %c0_145] : memref<2x64x32xbf16, #tpu.memory_space<vmem>>, vector<1x64x32xbf16>
    %419 = vector.shape_cast %418 : vector<1x64x32xbf16> to vector<64x32xbf16>
    %420 = arith.truncf %417 : vector<8x64xf32> to vector<8x64xbf16>
    %cst_146 = arith.constant dense<0.000000e+00> : vector<8x32xf32>
    %421 = tpu.matmul %420, %419, %cst_146 {dimension_numbers = #tpu.dot_dimension_numbers<[1], [0], [0], [1], [0, 0, 1, 1], [], []>} : vector<8x64xbf16>, vector<64x32xbf16>, vector<8x32xf32> -> vector<8x32xf32>
    %422 = vector.broadcast %248 : vector<1x32xf32> to vector<8x32xf32>
    %423 = arith.addf %421, %422 : vector<8x32xf32>
    %424 = arith.addf %371, %423 : vector<8x32xf32>
    %cst_147 = arith.constant dense<0.000000e+00> : vector<8xf32>
    %425 = vector.multi_reduction <add>, %424, %cst_147 [1] : vector<8x32xf32> to vector<8xf32>
    %426 = vector.shape_cast %425 : vector<8xf32> to vector<8x1xf32>
    %cst_148 = arith.constant 3.200000e+01 : f32
    %427 = vector.broadcast %cst_148 : f32 to vector<8x1xf32>
    %428 = arith.divf %426, %427 : vector<8x1xf32>
    %429 = vector.broadcast %428 : vector<8x1xf32> to vector<8x32xf32>
    %430 = arith.subf %424, %429 : vector<8x32xf32>
    %431 = arith.mulf %430, %430 : vector<8x32xf32>
    %cst_149 = arith.constant dense<0.000000e+00> : vector<8xf32>
    %432 = vector.multi_reduction <add>, %431, %cst_149 [1] : vector<8x32xf32> to vector<8xf32>
    %433 = vector.shape_cast %432 : vector<8xf32> to vector<8x1xf32>
    %cst_150 = arith.constant 3.200000e+01 : f32
    %434 = vector.broadcast %cst_150 : f32 to vector<8x1xf32>
    %435 = arith.divf %433, %434 : vector<8x1xf32>
    %cst_151 = arith.constant 9.99999974E-6 : f32
    %436 = vector.broadcast %cst_151 : f32 to vector<8x1xf32>
    %437 = arith.addf %435, %436 : vector<8x1xf32>
    %438 = math.rsqrt %437 : vector<8x1xf32>
    %439 = vector.broadcast %438 : vector<8x1xf32> to vector<8x32xf32>
    %440 = arith.mulf %430, %439 : vector<8x32xf32>
    %441 = vector.broadcast %251 : vector<1x32xf32> to vector<8x32xf32>
    %442 = arith.mulf %440, %441 : vector<8x32xf32>
    %443 = vector.broadcast %252 : vector<1x32xf32> to vector<8x32xf32>
    %444 = arith.addf %442, %443 : vector<8x32xf32>
    %cst_152 = arith.constant dense<0.000000e+00> : vector<8xf32>
    %445 = vector.multi_reduction <add>, %444, %cst_152 [1] : vector<8x32xf32> to vector<8xf32>
    %446 = vector.shape_cast %445 : vector<8xf32> to vector<8x1xf32>
    %cst_153 = arith.constant 3.200000e+01 : f32
    %447 = vector.broadcast %cst_153 : f32 to vector<8x1xf32>
    %448 = arith.divf %446, %447 : vector<8x1xf32>
    %449 = vector.broadcast %448 : vector<8x1xf32> to vector<8x32xf32>
    %450 = arith.subf %444, %449 : vector<8x32xf32>
    %451 = arith.mulf %450, %450 : vector<8x32xf32>
    %cst_154 = arith.constant dense<0.000000e+00> : vector<8xf32>
    %452 = vector.multi_reduction <add>, %451, %cst_154 [1] : vector<8x32xf32> to vector<8xf32>
    %453 = vector.shape_cast %452 : vector<8xf32> to vector<8x1xf32>
    %cst_155 = arith.constant 3.200000e+01 : f32
    %454 = vector.broadcast %cst_155 : f32 to vector<8x1xf32>
    %455 = arith.divf %453, %454 : vector<8x1xf32>
    %cst_156 = arith.constant 9.99999974E-6 : f32
    %456 = vector.broadcast %cst_156 : f32 to vector<8x1xf32>
    %457 = arith.addf %455, %456 : vector<8x1xf32>
    %458 = math.rsqrt %457 : vector<8x1xf32>
    %459 = vector.broadcast %458 : vector<8x1xf32> to vector<8x32xf32>
    %460 = arith.mulf %450, %459 : vector<8x32xf32>
    %461 = vector.broadcast %19 : vector<1x32xf32> to vector<8x32xf32>
    %462 = arith.mulf %460, %461 : vector<8x32xf32>
    %463 = vector.broadcast %20 : vector<1x32xf32> to vector<8x32xf32>
    %464 = arith.addf %462, %463 : vector<8x32xf32>
    %c0_157 = arith.constant 0 : index
    %c0_158 = arith.constant 0 : index
    %465 = vector.load %arg7[%c0_157, %c0_158] : memref<32x8xbf16, #tpu.memory_space<vmem>>, vector<32x8xbf16>
    %466 = arith.truncf %464 : vector<8x32xf32> to vector<8x32xbf16>
    %cst_159 = arith.constant dense<0.000000e+00> : vector<8x8xf32>
    %467 = tpu.matmul %466, %465, %cst_159 {dimension_numbers = #tpu.dot_dimension_numbers<[1], [0], [0], [1], [0, 0, 1, 1], [], []>} : vector<8x32xbf16>, vector<32x8xbf16>, vector<8x8xf32> -> vector<8x8xf32>
    %468 = vector.broadcast %21 : vector<1x8xf32> to vector<8x8xf32>
    %469 = arith.addf %467, %468 : vector<8x8xf32>
    %470 = vector.broadcast %15 : vector<8x1xf32> to vector<8x8xf32>
    %471 = arith.mulf %469, %470 : vector<8x8xf32>
    %472 = vector.broadcast %5 : vector<8x1xf32> to vector<8x8xf32>
    %473 = arith.addf %471, %472 : vector<8x8xf32>
    %474 = vector.shape_cast %473 : vector<8x8xf32> to vector<2x4x8xf32>
    %c0_160 = arith.constant 0 : index
    %c0_161 = arith.constant 0 : index
    %c0_162 = arith.constant 0 : index
    %475 = vector.load %arg9[%c0_160, %c0_161, %c0_162] : memref<2x4x8xf32, #tpu.memory_space<vmem>>, vector<2x4x8xf32>
    tpu.vector_store %arg9[%c0_160, %c0_161, %c0_162], %474 {strides = array<i32>} : memref<2x4x8xf32, #tpu.memory_space<vmem>>, vector<2x4x8xf32>,
    return
  }
  func.func @transform_0(%arg0: i32) -> (i32, i32, i32) {
    %c0_i32 = arith.constant 0 : i32
    %c0_i32_0 = arith.constant 0 : i32
    %c0_i32_1 = arith.constant 0 : i32
    return %arg0, %c0_i32, %c0_i32_0 : i32, i32, i32
  }
  func.func @transform_1(%arg0: i32) -> (i32, i32) {
    %c0_i32 = arith.constant 0 : i32
    %c0_i32_0 = arith.constant 0 : i32
    %c0_i32_1 = arith.constant 0 : i32
    return %c0_i32, %c0_i32_0 : i32, i32
  }
  func.func @transform_2(%arg0: i32) -> (i32, i32, i32) {
    %c0_i32 = arith.constant 0 : i32
    %c0_i32_0 = arith.constant 0 : i32
    %c0_i32_1 = arith.constant 0 : i32
    %c0_i32_2 = arith.constant 0 : i32
    return %c0_i32, %c0_i32_0, %c0_i32_1 : i32, i32, i32
  }
  func.func @transform_3(%arg0: i32) -> (i32, i32, i32) {
    %c0_i32 = arith.constant 0 : i32
    %c0_i32_0 = arith.constant 0 : i32
    %c0_i32_1 = arith.constant 0 : i32
    %c0_i32_2 = arith.constant 0 : i32
    return %c0_i32, %c0_i32_0, %c0_i32_1 : i32, i32, i32
  }
  func.func @transform_4(%arg0: i32) -> (i32, i32, i32) {
    %c0_i32 = arith.constant 0 : i32
    %c0_i32_0 = arith.constant 0 : i32
    %c0_i32_1 = arith.constant 0 : i32
    %c0_i32_2 = arith.constant 0 : i32
    return %c0_i32, %c0_i32_0, %c0_i32_1 : i32, i32, i32
  }
  func.func @transform_5(%arg0: i32) -> (i32, i32, i32) {
    %c0_i32 = arith.constant 0 : i32
    %c0_i32_0 = arith.constant 0 : i32
    %c0_i32_1 = arith.constant 0 : i32
    %c0_i32_2 = arith.constant 0 : i32
    return %c0_i32, %c0_i32_0, %c0_i32_1 : i32, i32, i32
  }
  func.func @transform_6(%arg0: i32) -> (i32, i32) {
    %c0_i32 = arith.constant 0 : i32
    %c0_i32_0 = arith.constant 0 : i32
    %c0_i32_1 = arith.constant 0 : i32
    return %c0_i32, %c0_i32_0 : i32, i32
  }
  func.func @transform_7(%arg0: i32) -> (i32, i32) {
    %c0_i32 = arith.constant 0 : i32
    %c0_i32_0 = arith.constant 0 : i32
    %c0_i32_1 = arith.constant 0 : i32
    return %c0_i32, %c0_i32_0 : i32, i32
  }
  func.func @transform_8(%arg0: i32) -> (i32, i32, i32) {
    %c0_i32 = arith.constant 0 : i32
    %c0_i32_0 = arith.constant 0 : i32
    %c0_i32_1 = arith.constant 0 : i32
    return %arg0, %c0_i32, %c0_i32_0 : i32, i32, i32
  }
}

</mosaic_0001>

<bundles_post_ra>
// kernel: it_forward.1
= control target key start
LH: loop header
LB: loop body
LE: loop exit
PB: predicated region body
PF: predicated region fallthrough
CT: control target
= control target key end

     0   :  { %13 = vsyncpa [#allocation3], 0  ;;  %s2333_s0 = inlined_call_operand.vmem [shape: f32[2,4,16], index: 0, kind: input, shape index: {}]   ;;  %s2334_s1 = inlined_call_operand.vmem [shape: bf16[16,32], index: 1, kind: input, shape index: {}]   ;;  %s2335_s2 = inlined_call_operand.vmem [shape: bf16[2,32,96], index: 2, kind: input, shape index: {}]   ;;  %s2336_s3 = inlined_call_operand.vmem [shape: bf16[2,32,32], index: 3, kind: input, shape index: {}]   ;;  %s2337_s4 = inlined_call_operand.vmem [shape: bf16[2,32,64], index: 4, kind: input, shape index: {}]   ;;  %s2338_s5 = inlined_call_operand.vmem [shape: bf16[2,64,32], index: 5, kind: input, shape index: {}]   ;;  %s2339_s6 = inlined_call_operand.vmem [shape: bf16[32,8], index: 6, kind: input, shape index: {}]   ;;  %s2340_s7 = inlined_call_operand.hbm [shape: f32[20,96], index: 7, kind: input, shape index: {}]   ;;  %s2341_s8 = inlined_call_operand.hbm [shape: f32[2,4,8], index: 8, kind: output, shape index: {}]  }
   0x1   :  { %14 = vsyncpa [#allocation4], 0  ;;  %s33_s29 = sshll.u32 %s2340_s7, 4  ;;  %s2010_s30 = smov [#allocation2]   ;;  %s34_s29 = int_to_ptr.hbm [resolvable:$true] %s33_s29 }
   0x2   :  { %s35_s9 = sshll.u32 %s2010_s30, 4  ;;  %s2011_s10 = smov 128   ;;  %s36_s9 = int_to_ptr.vmem [resolvable:$true] %s35_s9 }
   0x3   :  { %s2012_s11 = smov 8  }
   0x4   :  { %41 = dma.hbm_to_vmem [thread:$0]  %s34_s29, 384, %s36_s9, [#allocation3], %s2011_s10, %s2011_s10, %s2012_s11  }
   0x5   :  { %2006 = dma.done.wait [#allocation3], 384  }
   0x6   :  { %2007 = vsyncadd [#allocation3], 4294966912  ;;  %v47_v0 = vld [vmem:[%s2333_s0] sm:$0xf]  ;;  %v48_v1 = vld [vmem:[%s2333_s0 + $0x4] sm:$0xf] }
   0x7   :  { %51 = vst [vmem:[#allocation1] ss:$2 sm:$0xff] %v47_v0  ;;  %vm56_vm0 = vcmask 130048   ;;  %v2013_v4 = vmov 16.0   ;;  %v2014_v10 = vmov 839922192  }
   0x8   :  { %53 = vst [vmem:[#allocation1 + $0x1] ss:$2 sm:$0xff] %v48_v1  ;;  %1898 = vrcp.f32 %v2013_v4  ;;  %v70_v11 = vunpack.c.l.s4 %v2014_v10  ;;  %v2015_v12 = vmov 1985246804   ;;  %v1810_v34 = vld [vmem:[%s2334_s1] sm:$0xff]  ;;  %v1812_v43 = vld [vmem:[%s2335_s2 + $0x8] sm:$0xff] }
   0x9   :  { %v74_v13 = vunpack.c.l.s4 %v2015_v12  ;;  %179 = vmatpush.bf16.msra.mxu0 %v1810_v34  ;;  %235 = vmatpush.bf16.msra.mxu1 %v1812_v43  ;;  %v1811_v4 = vld [vmem:[%s2335_s2] sm:$0xff]  ;;  %vm225_vm12 = vcmask 261120   ;;  %v1879_v10 = vld [vmem:[#allocation2 + $0x4] ss:$0 sm:$0xff]  ;;  %s2016_s19 = smov 80   ;;  %s2017_s20 = smov 88  }
   0xa   :  { %v71_v15 = vunpack.c.0.s8 %v70_v11  ;;  %s2018_s21 = smov 96   ;;  %s2019_s22 = smov 72   ;;  %vm285_vm13 = vcmask 1043456   ;;  %vm281_vm14 = vcmask 64512  }
   0xb   :  { %v75_v16 = vunpack.c.0.s8 %v74_v13  ;;  %s2020_s23 = smov 64   ;;  %s2021_s24 = smov 120  }
   0xc   :  { %s2022_s25 = smov 104   ;;  %s2024_s26 = smov 112  }
   0xd   :  { %236 = vmatpush.bf16.msra.mxu1 %v1811_v4  ;;  %s2025_s27 = smov 48   ;;  %s2026_s28 = smov 40  }
   0xe   :  { %v1899_v5 = vpop.eup %1898  ;;  %s2027_s29 = smov 56   ;;  %s2028_s30 = smov 24  }
   0xf   :  { %v54_v2 = vld.sshfl [vmem:[#allocation1] sm:$0xff pattern:$0x75316420]  ;;  %v61_v6 = vmul.f32 16.0, %v1899_v5  ;;  %vm65_vm1 = vweird.f32 %v1899_v5  ;;  %s2029_s9 = smov 16   ;;  %s1659_s15 = sshll.u32 %s2341_s8, 4  ;;  %s1660_s15 = int_to_ptr.hbm [resolvable:$true] %s1659_s15 }
  0x10   :  { %v57_v3 = vsel %vm56_vm0, %v54_v2, 0.0  ;;  %s2032_s0 = smov 4  }
  0x11   :  { %58 = vadd.xlane.f32.xlu0 %v57_v3  ;;  %v62_v7 = vsub.f32 1.0, %v61_v6 }
  0x13   :  { %v63_v8 = vmul.f32 %v1899_v5, %v62_v7 }
  0x15   :  { %v64_v9 = vadd.f32 %v1899_v5, %v63_v8 }
  0x17   :  { %v66_v14 = vsel %vm65_vm1, %v1899_v5, %v64_v9  ;;  %v1878_v5 = vld [vmem:[#allocation2] ss:$0 sm:$0xff] }
  0x84   :  { %v59_v17 = vpop.xlane.xlu0 %58 }
  0x85   :  { %v2089_v18 = vmul.f32 %v66_v14, %v59_v17 }
  0x87   :  { %v72_v19 = vperm.slane %v2089_v18, %v71_v15  ;;  %v76_v20 = vperm.slane %v2089_v18, %v75_v16 }
  0x89   :  { %v79_v21 = vsub.f32 %v47_v0, %v72_v19  ;;  %v80_v22 = vsub.f32 %v48_v1, %v76_v20 }
  0x8b   :  { %v81_v23 = vmul.f32 %v79_v21, %v79_v21  ;;  %v82_v24 = vmul.f32 %v80_v22, %v80_v22 }
  0x8d   :  { %85 = vst [vmem:[#allocation1] ss:$2 sm:$0xff] %v81_v23 }
  0x8e   :  { %87 = vst [vmem:[#allocation1 + $0x1] ss:$2 sm:$0xff] %v82_v24 }
  0x95   :  { %v88_v25 = vld.sshfl [vmem:[#allocation1] sm:$0xff pattern:$0x75316420] }
  0x96   :  { %v90_v26 = vsel %vm56_vm0, %v88_v25, 0.0 }
  0x97   :  { %91 = vadd.xlane.f32.xlu0 %v90_v26 }
 0x10a   :  { %v92_v27 = vpop.xlane.xlu0 %91 }
 0x10b   :  { %v93_v28 = vmul.f32 %v92_v27, %v66_v14 }
 0x10d   :  { %v94_v29 = vadd.f32 1e-05, %v93_v28  ;;  %v185_v28 = vlaneseq }
 0x10f   :  { %1900 = vrsqrt.f32 %v94_v29  ;;  %vm102_vm2 = vcmp.eq.f32.partialorder %v94_v29, inf  ;;  %v105_v38 = vand.u32 2147483648, %v94_v29  ;;  %vm104_vm3 = vcmp.eq.f32.partialorder %v94_v29, 0.0 }
 0x115   :  { %v1901_v30 = vpop.eup %1900 }
 0x116   :  { %v96_v31 = vmul.f32 %v1901_v30, %v94_v29 }
 0x118   :  { %v97_v32 = vmul.f32 %v1901_v30, %v96_v31 }
 0x11a   :  { %v98_v33 = vmul.f32 0.5, %v97_v32 }
 0x11c   :  { %v99_v35 = vsub.f32 1.5, %v98_v33 }
 0x11e   :  { %v100_v36 = vmul.f32 %v1901_v30, %v99_v35  ;;  %v189_v30 = vand.u32 127, %v185_v28 }
 0x120   :  { %v101_v37 = vmul.f32 %v100_v36, %v94_v29  ;;  %v190_v32 = vcvt.s32.f32 %v189_v30 }
 0x122   :  { %v103_v39 = vsel %vm102_vm2, %v94_v29, %v101_v37  ;;  %v186_v29 = vshrl.u32 %v185_v28, 7  ;;  %v194_v34 = vadd.f32 0.5, %v190_v32 }
 0x123   :  { %v2097_v40 = vsel %vm104_vm3, %v105_v38, %v103_v39  ;;  %v2023_v39 = vmov -1e+30  }
 0x124   :  { %v111_v41 = vperm.slane %v2097_v40, %v71_v15  ;;  %v115_v42 = vperm.slane %v2097_v40, %v75_v16  ;;  %v187_v31 = vcvt.s32.f32 %v186_v29  ;;  %v195_v36 = vmul.f32 0.25, %v194_v34 }
 0x126   :  { %1902 = vrcp.f32 %v111_v41  ;;  %v129_v49 = vand.u32 2147483648, %v111_v41  ;;  %v127_v52 = vand.u32 2147483647, %v111_v41  ;;  %v144_v53 = vand.u32 2147483648, %v115_v42 }
 0x127   :  { %1904 = vrcp.f32 %v115_v42  ;;  %v142_v55 = vand.u32 2147483647, %v115_v42  ;;  %vm123_vm6 = vweird.f32 %v111_v41  ;;  %vm138_vm8 = vweird.f32 %v115_v42 }
 0x128   :  { %v130_v57 = vor.u32 1.1754944e-38, %v129_v49  ;;  %vm128_vm9 = vcmp.eq.f32.partialorder %v127_v52, 8.507059e+37  ;;  %v145_v60 = vor.u32 1.1754944e-38, %v144_v53  ;;  %v191_v33 = vadd.f32 0.5, %v187_v31 }
 0x129   :  { %vm143_vm11 = vcmp.eq.f32.partialorder %v142_v55, 8.507059e+37  ;;  %v196_v38 = vfloor.f32 %v195_v36 }
 0x12a   :  { %v192_v35 = vmul.f32 0.25, %v191_v33 }
 0x12c   :  { %v1903_v44 = vpop.eup %1902  ;;  %v193_v37 = vfloor.f32 %v192_v35 }
 0x12d   :  { %v1905_v45 = vpop.eup %1904  ;;  %v119_v46 = vmul.f32 %v1903_v44, %v111_v41  ;;  %vm124_vm4 = vweird.f32 %v1903_v44 }
 0x12e   :  { %v134_v47 = vmul.f32 %v1905_v45, %v115_v42  ;;  %vm139_vm5 = vweird.f32 %v1905_v45  ;;  %vm125_vm7 = vmor %vm123_vm6, %vm124_vm4  ;;  %vm197_vm15 = vcmp.eq.f32.partialorder %v193_v37, %v196_v38 }
 0x12f   :  { %v120_v48 = vsub.f32 1.0, %v119_v46  ;;  %vm140_vm10 = vmor %vm138_vm8, %vm139_vm5  ;;  %v2126_v41 = vsel %vm197_vm15, 0.0, %v2023_v39 }
 0x130   :  { %v135_v50 = vsub.f32 1.0, %v134_v47 }
 0x131   :  { %v121_v51 = vmul.f32 %v1903_v44, %v120_v48 }
 0x132   :  { %v136_v54 = vmul.f32 %v1905_v45, %v135_v50 }
 0x133   :  { %v122_v56 = vadd.f32 %v1903_v44, %v121_v51 }
 0x134   :  { %v137_v58 = vadd.f32 %v1905_v45, %v136_v54 }
 0x135   :  { %v126_v59 = vsel %vm125_vm7, %v1903_v44, %v122_v56 }
 0x136   :  { %v131_v61 = vsel %vm128_vm9, %v130_v57, %v126_v59  ;;  %v141_v62 = vsel %vm140_vm10, %v1905_v45, %v137_v58 }
 0x137   :  { %v132_v63 = vmul.f32 %v131_v61, %v79_v21  ;;  %v146_v0 = vsel %vm143_vm11, %v145_v60, %v141_v62 }
 0x138   :  { %v147_v1 = vmul.f32 %v146_v0, %v80_v22 }
 0x139   :  { %156 = vst [vmem:[#allocation1] ss:$2 sm:$0xff] %v132_v63 }
 0x13a   :  { %158 = vst [vmem:[#allocation1 + $0x1] ss:$2 sm:$0xff] %v147_v1 }
 0x141   :  { %v159_v2 = vld.sshfl [vmem:[#allocation1] sm:$0xff pattern:$0x75316420] }
 0x142   :  { %v161_v3 = vpack.c.bf16 %v159_v2, %v159_v2 }
 0x144   :  { %1676 = vmatmul.msk.bf16.vlgmr.msra.gmra.mxu0 %vm56_vm0, %v161_v3 }
 0x1c1   :  { %v181_v6 = vpop.f32.mrf.mxu0 }
 0x1c2   :  { %v2108_v7 = vadd.f32 %v1878_v5, %v181_v6 }
 0x1c4   :  { %v211_v8 = vpack.c.bf16 %v2108_v7, %v2108_v7 }
 0x1c6   :  { %1685 = vmatmul.msk.bf16.vlgmr.msra.gmra.mxu1 %vm225_vm12, %v211_v8 }
 0x1c9   :  { %v183_v9 = vpop.f32.mrf.mxu0 }
 0x243   :  { %v238_v11 = vpop.f32.mrf.mxu1 }
 0x244   :  { %v239_v12 = vadd.f32 %v1879_v10, %v238_v11 }
 0x246   :  { %454 = vrot.lane.b32.xlu2 %v239_v12, %s2016_s19  ;;  %350 = vrot.lane.b32.xlu0 %v239_v12, %s2017_s20  ;;  %v2116_v14 = vpack.c.bf16 %v239_v12, %v239_v12  ;;  %v242_v15 = vmul.f32 0.35355338, %v239_v12 }
 0x247   :  { %244 = vrot.lane.b32.xlu1 %v239_v12, %s2018_s21 }
 0x248   :  { %v279_v16 = vpack.c.bf16 %v242_v15, %v242_v15 }
 0x24b   :  { %v240_v13 = vpop.f32.mrf.mxu1 }
 0x24e   :  { %557 = vrot.lane.b32.xlu0 %v239_v12, %s2019_s22  ;;  %329 = vrot.lane.b32.xlu2 %v2116_v14, %s2020_s23 }
 0x256   :  { %387 = vrot.lane.b32.xlu0 %v279_v16, %s2021_s24 }
 0x25e   :  { %593 = vrot.lane.b32.xlu0 %v279_v16, %s2022_s25 }
 0x2a0   :  { %v455_v17 = vpop.permute.xlu2 %454 }
 0x2a8   :  { %v330_v19 = vpop.permute.xlu2 %329 }
 0x2a9   :  { %v335_v20 = vsel %vm285_vm13, %v330_v19, 0 }
 0x2aa   :  { %344 = vmatpush.bf16.msra.mxu3 %v335_v20 }
 0x2b8   :  { %v351_v21 = vpop.permute.xlu0 %350 }
 0x2b9   :  { %v245_v22 = vpop.permute.xlu1 %244 }
 0x2ba   :  { %247 = vxpose.xlu1.b32.start.end [1/1] (short) (narrow) %v245_v22, 8 }
 0x2c0   :  { %v558_v23 = vpop.permute.xlu0 %557 }
 0x2c1   :  { %v1857_v24 = vpack.i.bf16 %v558_v23, %v455_v17 }
 0x2c3   :  { %1858 = vxpose.xlu0.b32.start.end [1/1] (short) (narrow) %v1857_v24, 8 }
 0x2c8   :  { %v388_v51 = vpop.permute.xlu0 %387 }
 0x2d0   :  { %v594_v52 = vpop.permute.xlu0 %593 }
 0x35e   :  { %v263_v25 = vpop.trf.xlu1 }
 0x35f   :  { %v280_v26 = vpack.c.bf16 %v263_v25, %v263_v25 }
 0x361   :  { %v287_v27 = vsel %vm285_vm13, %v280_v26, 0 }
 0x362   :  { %296 = vmatpush.bf16.msra.mxu2 %v287_v27 }
 0x365   :  { %1686 = vmatmul.msk.bf16.vlgmr.msra.gmra.mxu2 %vm281_vm14, %v279_v16 }
 0x367   :  { %v1859_v53 = vpop.trf.xlu0 }
 0x368   :  { %v1860_v54 = vunpack.i.l.bf16 %v1859_v53  ;;  %v1863_v8 = vunpack.i.h.bf16 %v1859_v53 }
 0x36a   :  { %v489_v56 = vpack.c.bf16 %v1860_v54, %v1860_v54  ;;  %v592_v9 = vpack.c.bf16 %v1863_v8, %v1863_v8 }
 0x36c   :  { %v496_v57 = vsel %vm285_vm13, %v489_v56, 0  ;;  %v599_v12 = vsel %vm285_vm13, %v592_v9, 0 }
 0x36d   :  { %505 = vmatpush.bf16.msrb.mxu3 %v496_v57 }
 0x3e8   :  { %v298_v42 = vpop.f32.mrf.mxu2 }
 0x3e9   :  { %v299_v43 = vadd.f32 %v298_v42, %v2126_v41 }
 0x3eb   :  { %v302_v44 = vsel %vm281_vm14, %v299_v43, -inf }
 0x3ec   :  { %303 = vmax.xlane.f32.xlu2 %v302_v44 }
 0x3f0   :  { %v300_v45 = vpop.f32.mrf.mxu2 }
 0x404   :  { %490 = vrot.lane.b32.xlu2 %v279_v16, %s2024_s26 }
 0x45f   :  { %v304_v46 = vpop.xlane.xlu2 %303 }
 0x460   :  { %v305_v47 = vsub.f32 %v299_v43, %v304_v46 }
 0x462   :  { %v306_v48 = vmul.f32 1.442695, %v305_v47 }
 0x464   :  { %1906 = vpow2.f32 %v306_v48 }
 0x467   :  { %v491_v55 = vpop.permute.xlu2 %490 }
 0x46a   :  { %v1907_v49 = vpop.eup %1906 }
 0x46b   :  { %v308_v50 = vsel %vm281_vm14, %v1907_v49, 0.0 }
 0x46c   :  { %309 = vadd.xlane.f32.xlu2 %v308_v50 }
 0x495   :  { %353 = vxpose.xlu2.b32.start.end [1/1] (short) (narrow) %v351_v21, 8 }
 0x4df   :  { %v310_v58 = vpop.xlane.xlu2 %309 }
 0x4e0   :  { %1908 = vrcp.f32 %v310_v58  ;;  %v322_v62 = vand.u32 2147483648, %v310_v58  ;;  %v320_v0 = vand.u32 2147483647, %v310_v58  ;;  %vm316_vm2 = vweird.f32 %v310_v58 }
 0x4e2   :  { %v323_v2 = vor.u32 1.1754944e-38, %v322_v62  ;;  %vm321_vm4 = vcmp.eq.f32.partialorder %v320_v0, 8.507059e+37 }
 0x4e6   :  { %v1909_v59 = vpop.eup %1908 }
 0x4e7   :  { %v312_v60 = vmul.f32 %v1909_v59, %v310_v58  ;;  %vm317_vm1 = vweird.f32 %v1909_v59 }
 0x4e8   :  { %vm318_vm3 = vmor %vm316_vm2, %vm317_vm1 }
 0x4e9   :  { %v313_v61 = vsub.f32 1.0, %v312_v60 }
 0x4eb   :  { %v314_v63 = vmul.f32 %v1909_v59, %v313_v61 }
 0x4ed   :  { %v315_v1 = vadd.f32 %v1909_v59, %v314_v63 }
 0x4ef   :  { %v319_v3 = vsel %vm318_vm3, %v1909_v59, %v315_v1 }
 0x4f0   :  { %v324_v4 = vsel %vm321_vm4, %v323_v2, %v319_v3 }
 0x4f1   :  { %v325_v5 = vmul.f32 %v1907_v49, %v324_v4 }
 0x4f3   :  { %v326_v6 = vpack.c.bf16 %v325_v5, %v325_v5 }
 0x4f5   :  { %1687 = vmatmul.msk.bf16.vlgmr.msra.gmra.mxu3 %vm281_vm14, %v326_v6 }
 0x505   :  { %1690 = vmatmul.msk.bf16.vlgmr.msrb.gmra.mxu3 %vm281_vm14, %v491_v55 }
 0x52e   :  { %v369_v10 = vpop.trf.xlu2 }
 0x52f   :  { %v385_v11 = vpack.c.bf16 %v369_v10, %v369_v10 }
 0x531   :  { %v393_v13 = vsel %vm285_vm13, %v385_v11, 0 }
 0x532   :  { %402 = vmatpush.bf16.msrb.mxu0 %v393_v13 }
 0x535   :  { %1688 = vmatmul.msk.bf16.vlgmr.msrb.gmra.mxu0 %vm281_vm14, %v388_v51 }
 0x536   :  { %608 = vmatpush.bf16.msra.mxu0 %v599_v12 }
 0x545   :  { %1692 = vmatmul.msk.bf16.vlgmr.msra.gmra.mxu0 %vm281_vm14, %v594_v52 }
 0x578   :  { %v2139_v15 = vpop.f32.mrf.mxu3 }
 0x580   :  { %v348_v16 = vpop.f32.mrf.mxu3 }
 0x588   :  { %v507_v17 = vpop.f32.mrf.mxu3 }
 0x589   :  { %v508_v19 = vadd.f32 %v507_v17, %v2126_v41 }
 0x58b   :  { %v511_v20 = vsel %vm281_vm14, %v508_v19, -inf }
 0x58c   :  { %512 = vmax.xlane.f32.xlu2 %v511_v20 }
 0x590   :  { %v509_v21 = vpop.f32.mrf.mxu3 }
 0x5a4   :  { %536 = vrot.lane.b32.xlu2 %v2116_v14, %s2025_s27 }
 0x5b2   :  { %v404_v22 = vpop.f32.mrf.mxu0 }
 0x5b3   :  { %v405_v23 = vadd.f32 %v404_v22, %v2126_v41 }
 0x5b5   :  { %v408_v24 = vsel %vm281_vm14, %v405_v23, -inf }
 0x5b6   :  { %409 = vmax.xlane.f32.xlu1 %v408_v24 }
 0x5ba   :  { %v406_v25 = vpop.f32.mrf.mxu0 }
 0x5c2   :  { %v610_v26 = vpop.f32.mrf.mxu0 }
 0x5c3   :  { %v611_v27 = vadd.f32 %v610_v26, %v2126_v41 }
 0x5c5   :  { %v614_v28 = vsel %vm281_vm14, %v611_v27, -inf }
 0x5c6   :  { %615 = vmax.xlane.f32.xlu0 %v614_v28 }
 0x5ca   :  { %v612_v29 = vpop.f32.mrf.mxu0 }
 0x5da   :  { %639 = vrot.lane.b32.xlu0 %v2116_v14, %s2026_s28 }
 0x5ff   :  { %v513_v30 = vpop.xlane.xlu2 %512 }
 0x600   :  { %v514_v45 = vsub.f32 %v508_v19, %v513_v30 }
 0x602   :  { %v515_v46 = vmul.f32 1.442695, %v514_v45 }
 0x607   :  { %v537_v31 = vpop.permute.xlu2 %536 }
 0x608   :  { %v542_v32 = vsel %vm285_vm13, %v537_v31, 0 }
 0x609   :  { %551 = vmatpush.bf16.msrb.mxu1 %v542_v32 }
 0x629   :  { %v410_v33 = vpop.xlane.xlu1 %409 }
 0x62a   :  { %v411_v34 = vsub.f32 %v405_v23, %v410_v33 }
 0x62c   :  { %v412_v35 = vmul.f32 1.442695, %v411_v34 }
 0x62e   :  { %1910 = vpow2.f32 %v412_v35 }
 0x634   :  { %v1911_v36 = vpop.eup %1910 }
 0x635   :  { %v414_v37 = vsel %vm281_vm14, %v1911_v36, 0.0 }
 0x636   :  { %415 = vadd.xlane.f32.xlu1 %v414_v37  ;;  %v1814_v37 = vld [vmem:[%s2336_s3 + $0x8] sm:$0xff] }
 0x637   :  { %703 = vmatpush.bf16.msra.mxu3 %v1814_v37 }
 0x639   :  { %v616_v38 = vpop.xlane.xlu0 %615 }
 0x63a   :  { %v617_v39 = vsub.f32 %v611_v27, %v616_v38  ;;  %v1813_v38 = vld [vmem:[%s2336_s3] sm:$0xff] }
 0x63b   :  { %704 = vmatpush.bf16.msra.mxu3 %v1813_v38  ;;  %v1817_v38 = vld [vmem:[%s2338_s5] sm:$0xff] }
 0x63c   :  { %v618_v42 = vmul.f32 1.442695, %v617_v39 }
 0x63e   :  { %1912 = vpow2.f32 %v618_v42 }
 0x63f   :  { %1914 = vpow2.f32 %v515_v46 }
 0x644   :  { %v1913_v43 = vpop.eup %1912 }
 0x645   :  { %v620_v44 = vsel %vm281_vm14, %v1913_v43, 0.0  ;;  %v2156_v47 = vpop.eup %1914 }
 0x646   :  { %621 = vadd.xlane.f32.xlu1 %v620_v44  ;;  %v517_v48 = vsel %vm281_vm14, %v2156_v47, 0.0 }
 0x64c   :  { %v640_v63 = vpop.permute.xlu0 %639 }
 0x64d   :  { %v645_v4 = vsel %vm285_vm13, %v640_v63, 0  ;;  %v1816_v63 = vld [vmem:[%s2337_s4 + $0x8] sm:$0xff] }
 0x64e   :  { %771 = vmatpush.bf16.msra.mxu1 %v1816_v63 }
 0x65f   :  { %433 = vrot.lane.b32.xlu1 %v2116_v14, %s2027_s29 }
 0x689   :  { %518 = vadd.xlane.f32.xlu1 %v517_v48  ;;  %v1880_v48 = vld [vmem:[#allocation2 + $0x5] ss:$0 sm:$0xff] }
 0x6a9   :  { %v416_v49 = vpop.xlane.xlu1 %415 }
 0x6aa   :  { %1916 = vrcp.f32 %v416_v49  ;;  %v428_v56 = vand.u32 2147483648, %v416_v49  ;;  %vm422_vm6 = vweird.f32 %v416_v49  ;;  %v426_v57 = vand.u32 2147483647, %v416_v49 }
 0x6ac   :  { %v429_v60 = vor.u32 1.1754944e-38, %v428_v56  ;;  %vm427_vm8 = vcmp.eq.f32.partialorder %v426_v57, 8.507059e+37 }
 0x6b0   :  { %v1917_v50 = vpop.eup %1916 }
 0x6b1   :  { %v418_v51 = vmul.f32 %v1917_v50, %v416_v49  ;;  %vm423_vm5 = vweird.f32 %v1917_v50 }
 0x6b2   :  { %vm424_vm7 = vmor %vm422_vm6, %vm423_vm5  ;;  %vm674_vm5 = vcmask 195584  }
 0x6b3   :  { %v419_v52 = vsub.f32 1.0, %v418_v51 }
 0x6b5   :  { %v420_v54 = vmul.f32 %v1917_v50, %v419_v52 }
 0x6b7   :  { %v421_v55 = vadd.f32 %v1917_v50, %v420_v54  ;;  %v2030_v54 = vmov 32.0  }
 0x6b9   :  { %v622_v53 = vpop.xlane.xlu1 %621  ;;  %v425_v59 = vsel %vm424_vm7, %v1917_v50, %v421_v55 }
 0x6ba   :  { %1918 = vrcp.f32 %v622_v53  ;;  %v430_v61 = vsel %vm427_vm8, %v429_v60, %v425_v59  ;;  %v634_v8 = vand.u32 2147483648, %v622_v53  ;;  %vm628_vm10 = vweird.f32 %v622_v53 }
 0x6bb   :  { %v431_v0 = vmul.f32 %v1911_v36, %v430_v61  ;;  %v632_v9 = vand.u32 2147483647, %v622_v53 }
 0x6bc   :  { %v635_v11 = vor.u32 1.1754944e-38, %v634_v8 }
 0x6bd   :  { %v432_v5 = vpack.c.bf16 %v431_v0, %v431_v0  ;;  %vm633_vm15 = vcmp.eq.f32.partialorder %v632_v9, 8.507059e+37  ;;  %v1815_v0 = vld [vmem:[%s2337_s4] sm:$0xff] }
 0x6be   :  { %772 = vmatpush.bf16.msra.mxu1 %v1815_v0  ;;  %v1884_v0 = vld [vmem:[#allocation2 + $0x7] ss:$0 sm:$0xff] }
 0x6c0   :  { %v1919_v14 = vpop.eup %1918 }
 0x6c1   :  { %v624_v58 = vmul.f32 %v1919_v14, %v622_v53  ;;  %vm629_vm9 = vweird.f32 %v1919_v14 }
 0x6c2   :  { %vm630_vm11 = vmor %vm628_vm10, %vm629_vm9 }
 0x6c3   :  { %v625_v62 = vsub.f32 1.0, %v624_v58 }
 0x6c5   :  { %v626_v2 = vmul.f32 %v1919_v14, %v625_v62 }
 0x6c7   :  { %v627_v6 = vadd.f32 %v1919_v14, %v626_v2 }
 0x6c9   :  { %v631_v10 = vsel %vm630_vm11, %v1919_v14, %v627_v6 }
 0x6ca   :  { %v636_v12 = vsel %vm633_vm15, %v635_v11, %v631_v10  ;;  %v1881_v11 = vld [vmem:[#allocation2 + $0x8] ss:$0 sm:$0xff] }
 0x6cb   :  { %v637_v13 = vmul.f32 %v1913_v43, %v636_v12 }
 0x6cd   :  { %v638_v16 = vpack.c.bf16 %v637_v13, %v637_v13  ;;  %v1882_v13 = vld [vmem:[#allocation2 + $0x9] ss:$0 sm:$0xff] }
 0x6d1   :  { %v434_v1 = vpop.permute.xlu1 %433 }
 0x6d2   :  { %v439_v3 = vsel %vm285_vm13, %v434_v1, 0 }
 0x6d3   :  { %448 = vmatpush.bf16.msrb.mxu2 %v439_v3 }
 0x6d6   :  { %1689 = vmatmul.msk.bf16.vlgmr.msrb.gmra.mxu2 %vm281_vm14, %v432_v5 }
 0x6d7   :  { %654 = vmatpush.bf16.msra.mxu2 %v645_v4 }
 0x6e6   :  { %1693 = vmatmul.msk.bf16.vlgmr.msra.gmra.mxu2 %vm281_vm14, %v638_v16 }
 0x6fc   :  { %v519_v17 = vpop.xlane.xlu1 %518 }
 0x6fd   :  { %1920 = vrcp.f32 %v519_v17  ;;  %v531_v22 = vand.u32 2147483648, %v519_v17  ;;  %v529_v24 = vand.u32 2147483647, %v519_v17  ;;  %vm525_vm2 = vweird.f32 %v519_v17 }
 0x6fe   :  { %1922 = vrcp.f32 %v2030_v54 }
 0x6ff   :  { %v532_v26 = vor.u32 1.1754944e-38, %v531_v22  ;;  %vm530_vm4 = vcmp.eq.f32.partialorder %v529_v24, 8.507059e+37 }
 0x703   :  { %v1921_v19 = vpop.eup %1920 }
 0x704   :  { %v521_v20 = vmul.f32 %v1921_v19, %v519_v17  ;;  %vm526_vm1 = vweird.f32 %v1921_v19 }
 0x705   :  { %vm527_vm3 = vmor %vm525_vm2, %vm526_vm1 }
 0x706   :  { %v522_v21 = vsub.f32 1.0, %v521_v20 }
 0x708   :  { %v523_v23 = vmul.f32 %v1921_v19, %v522_v21  ;;  %v1883_v21 = vld [vmem:[#allocation2 + $0x6] ss:$0 sm:$0xff] }
 0x70a   :  { %v524_v25 = vadd.f32 %v1921_v19, %v523_v23 }
 0x70c   :  { %v528_v27 = vsel %vm527_vm3, %v1921_v19, %v524_v25  ;;  %vm852_vm3 = vcmask 523264  }
 0x70d   :  { %v533_v28 = vsel %vm530_vm4, %v532_v26, %v528_v27 }
 0x70e   :  { %v534_v29 = vmul.f32 %v2156_v47, %v533_v28 }
 0x710   :  { %v535_v30 = vpack.c.bf16 %v534_v29, %v534_v29  ;;  %v1820_v29 = vld [vmem:[%s2338_s5 + $0x18] sm:$0xff] }
 0x711   :  { %860 = vmatpush.bf16.msrb.mxu0 %v1820_v29 }
 0x712   :  { %1691 = vmatmul.msk.bf16.vlgmr.msrb.gmra.mxu1 %vm281_vm14, %v535_v30  ;;  %v1819_v30 = vld [vmem:[%s2338_s5 + $0x10] sm:$0xff] }
 0x715   :  { %861 = vmatpush.bf16.msrb.mxu0 %v1819_v30 }
 0x759   :  { %v450_v31 = vpop.f32.mrf.mxu2 }
 0x75a   :  { %661 = vrot.lane.b32.xlu0 %v450_v31, %s2012_s11 }
 0x761   :  { %v452_v32 = vpop.f32.mrf.mxu2 }
 0x769   :  { %v656_v33 = vpop.f32.mrf.mxu2 }
 0x76a   :  { %669 = vrot.lane.b32.xlu0 %v656_v33, %s2028_s30  ;;  %v1818_v33 = vld [vmem:[%s2338_s5 + $0x8] sm:$0xff] }
 0x76b   :  { %862 = vmatpush.bf16.msrb.mxu0 %v1818_v33  ;;  %v1887_v33 = vld [vmem:[#allocation2 + $0xc] ss:$0 sm:$0xff] }
 0x76f   :  { %863 = vmatpush.bf16.msrb.mxu0 %v1817_v38 }
 0x771   :  { %v658_v34 = vpop.f32.mrf.mxu2 }
 0x78f   :  { %v553_v35 = vpop.f32.mrf.mxu1 }
 0x790   :  { %665 = vrot.lane.b32.xlu2 %v553_v35, %s2029_s9 }
 0x797   :  { %v555_v36 = vpop.f32.mrf.mxu1 }
 0x7cc   :  { %v662_v39 = vpop.permute.xlu0 %661 }
 0x7cd   :  { %v672_v42 = vsel %vm281_vm14, %v2139_v15, %v662_v39  ;;  %v1923_v15 = vpop.eup %1922 }
 0x7ce   :  { %v715_v55 = vmul.f32 32.0, %v1923_v15  ;;  %vm719_vm6 = vweird.f32 %v1923_v15 }
 0x7d0   :  { %v716_v14 = vsub.f32 1.0, %v715_v55 }
 0x7d2   :  { %v717_v56 = vmul.f32 %v1923_v15, %v716_v14 }
 0x7d4   :  { %v718_v57 = vadd.f32 %v1923_v15, %v717_v56 }
 0x7d6   :  { %v2182_v58 = vsel %vm719_vm6, %v1923_v15, %v718_v57 }
 0x7dc   :  { %v670_v44 = vpop.permute.xlu0 %669 }
 0x7ea   :  { %v666_v43 = vpop.permute.xlu2 %665 }
 0x7eb   :  { %v673_v45 = vsel %vm56_vm0, %v672_v42, %v666_v43 }
 0x7ec   :  { %v675_v46 = vsel %vm674_vm5, %v673_v45, %v670_v44 }
 0x7ed   :  { %v680_v47 = vpack.c.bf16 %v675_v46, %v675_v46 }
 0x7ef   :  { %1702 = vmatmul.msk.bf16.vlgmr.msra.gmra.mxu3 %vm225_vm12, %v680_v47 }
 0x872   :  { %v706_v49 = vpop.f32.mrf.mxu3 }
 0x873   :  { %v707_v50 = vadd.f32 %v1880_v48, %v706_v49 }
 0x875   :  { %v710_v51 = vadd.f32 %v707_v50, %v2108_v7 }
 0x877   :  { %v711_v52 = vsel %vm225_vm12, %v710_v51, 0.0 }
 0x878   :  { %712 = vadd.xlane.f32.xlu2 %v711_v52 }
 0x87a   :  { %v708_v53 = vpop.f32.mrf.mxu3 }
 0x8eb   :  { %v713_v59 = vpop.xlane.xlu2 %712 }
 0x8ec   :  { %v721_v60 = vmul.f32 %v2182_v58, %v713_v59 }
 0x8ee   :  { %v722_v61 = vsub.f32 %v710_v51, %v721_v60 }
 0x8f0   :  { %v723_v62 = vmul.f32 %v722_v61, %v722_v61 }
 0x8f2   :  { %v724_v7 = vsel %vm225_vm12, %v723_v62, 0.0 }
 0x8f3   :  { %725 = vadd.xlane.f32.xlu1 %v724_v7 }
 0x966   :  { %v726_v1 = vpop.xlane.xlu1 %725 }
 0x967   :  { %v727_v2 = vmul.f32 %v726_v1, %v2182_v58 }
 0x969   :  { %v728_v3 = vadd.f32 1e-05, %v727_v2 }
 0x96b   :  { %1924 = vrsqrt.f32 %v728_v3  ;;  %vm735_vm8 = vweird.f32 %v728_v3 }
 0x971   :  { %v1925_v4 = vpop.eup %1924 }
 0x972   :  { %v730_v5 = vmul.f32 %v1925_v4, %v728_v3  ;;  %vm736_vm7 = vweird.f32 %v1925_v4 }
 0x973   :  { %vm737_vm9 = vmor %vm735_vm8, %vm736_vm7 }
 0x974   :  { %v731_v6 = vmul.f32 %v1925_v4, %v730_v5 }
 0x976   :  { %v732_v8 = vmul.f32 0.5, %v731_v6 }
 0x978   :  { %v733_v9 = vsub.f32 1.5, %v732_v8 }
 0x97a   :  { %v734_v10 = vmul.f32 %v1925_v4, %v733_v9 }
 0x97c   :  { %v738_v12 = vsel %vm737_vm9, %v1925_v4, %v734_v10 }
 0x97d   :  { %v739_v16 = vmul.f32 %v738_v12, %v722_v61  ;;  %v1822_v12 = vld [vmem:[%s2335_s2 + $0x18] sm:$0xff] }
 0x97e   :  { %932 = vmatpush.bf16.msrb.mxu2 %v1822_v12 }
 0x97f   :  { %v741_v17 = vmul.f32 %v1881_v11, %v739_v16 }
 0x981   :  { %v743_v19 = vadd.f32 %v1882_v13, %v741_v17  ;;  %v1821_v13 = vld [vmem:[%s2335_s2 + $0x10] sm:$0xff] }
 0x982   :  { %933 = vmatpush.bf16.msrb.mxu2 %v1821_v13 }
 0x983   :  { %v748_v20 = vpack.c.bf16 %v743_v19, %v743_v19 }
 0x985   :  { %1711 = vmatmul.msk.bf16.vlgmr.msra.gmra.mxu1 %vm225_vm12, %v748_v20 }
 0xa02   :  { %v774_v22 = vpop.f32.mrf.mxu1 }
 0xa03   :  { %v775_v23 = vadd.f32 %v1883_v21, %v774_v22 }
 0xa05   :  { %v778_v24 = vmul.f32 0.70710677, %v775_v23  ;;  %v815_v61 = vmul.f32 0.5, %v775_v23 }
 0xa07   :  { %v779_v25 = vand.u32 2147483647, %v778_v24  ;;  %vm812_vm2 = vcmp.lt.f32.partialorder %v778_v24, 0.0 }
 0xa09   :  { %v780_v26 = vmul.f32 0.3275911, %v779_v25  ;;  %v806_v45 = vsub.f32 0.0, %v779_v25 }
 0xa0a   :  { %v776_v27 = vpop.f32.mrf.mxu1 }
 0xa0b   :  { %v781_v28 = vadd.f32 1.0, %v780_v26  ;;  %v807_v48 = vmul.f32 %v806_v45, %v779_v25  ;;  %v1885_v26 = vld [vmem:[#allocation2 + $0xa] ss:$0 sm:$0xff] }
 0xa0d   :  { %1926 = vrcp.f32 %v781_v28  ;;  %v793_v35 = vand.u32 2147483648, %v781_v28  ;;  %v791_v37 = vand.u32 2147483647, %v781_v28  ;;  %vm787_vm11 = vweird.f32 %v781_v28 }
 0xa0e   :  { %v808_v51 = vmul.f32 1.442695, %v807_v48 }
 0xa0f   :  { %v794_v42 = vor.u32 1.1754944e-38, %v793_v35  ;;  %vm792_vm1 = vcmp.eq.f32.partialorder %v791_v37, 8.507059e+37 }
 0xa10   :  { %1928 = vpow2.f32 %v808_v51 }
 0xa13   :  { %v1927_v31 = vpop.eup %1926 }
 0xa14   :  { %v783_v32 = vmul.f32 %v1927_v31, %v781_v28  ;;  %vm788_vm10 = vweird.f32 %v1927_v31  ;;  %v1886_v28 = vld [vmem:[#allocation2 + $0xb] ss:$0 sm:$0xff] }
 0xa15   :  { %vm789_vm15 = vmor %vm787_vm11, %vm788_vm10 }
 0xa16   :  { %v784_v34 = vsub.f32 1.0, %v783_v32  ;;  %v1929_v14 = vpop.eup %1928 }
 0xa18   :  { %v785_v36 = vmul.f32 %v1927_v31, %v784_v34 }
 0xa1a   :  { %v786_v39 = vadd.f32 %v1927_v31, %v785_v36 }
 0xa1c   :  { %v790_v43 = vsel %vm789_vm15, %v1927_v31, %v786_v39 }
 0xa1d   :  { %v795_v44 = vsel %vm792_vm1, %v794_v42, %v790_v43 }
 0xa1e   :  { %v797_v46 = vmul.f32 1.0614054, %v795_v44 }
 0xa20   :  { %v798_v47 = vadd.f32 -1.4531521, %v797_v46 }
 0xa22   :  { %v799_v49 = vmul.f32 %v798_v47, %v795_v44 }
 0xa24   :  { %v800_v50 = vadd.f32 1.4214138, %v799_v49 }
 0xa26   :  { %v801_v52 = vmul.f32 %v800_v50, %v795_v44 }
 0xa28   :  { %v802_v53 = vadd.f32 -0.28449672, %v801_v52 }
 0xa2a   :  { %v803_v54 = vmul.f32 %v802_v53, %v795_v44 }
 0xa2c   :  { %v804_v15 = vadd.f32 0.2548296, %v803_v54 }
 0xa2e   :  { %v805_v55 = vmul.f32 %v804_v15, %v795_v44 }
 0xa30   :  { %v810_v56 = vmul.f32 %v1929_v14, %v805_v55 }
 0xa32   :  { %v811_v57 = vsub.f32 1.0, %v810_v56 }
 0xa34   :  { %v813_v59 = vsub.f32 0.0, %v811_v57 }
 0xa36   :  { %v814_v60 = vsel %vm812_vm2, %v813_v59, %v811_v57 }
 0xa37   :  { %v816_v62 = vadd.f32 1.0, %v814_v60 }
 0xa39   :  { %v817_v7 = vmul.f32 %v816_v62, %v815_v61 }
 0xa3b   :  { %v826_v63 = vpack.c.bf16 %v817_v7, %v817_v7 }
 0xa3d   :  { %1728 = vmatmul.msk.bf16.vlgmr.msrb.gmra.mxu0 %vm852_vm3, %v826_v63 }
 0xaba   :  { %v865_v1 = vpop.f32.mrf.mxu0 }
 0xabb   :  { %v866_v2 = vadd.f32 %v1884_v0, %v865_v1 }
 0xabd   :  { %v869_v3 = vadd.f32 %v866_v2, %v743_v19 }
 0xabf   :  { %v870_v4 = vsel %vm225_vm12, %v869_v3, 0.0 }
 0xac0   :  { %871 = vadd.xlane.f32.xlu0 %v870_v4 }
 0xac2   :  { %v867_v5 = vpop.f32.mrf.mxu0 }
 0xb33   :  { %v872_v6 = vpop.xlane.xlu0 %871 }
 0xb34   :  { %v873_v8 = vmul.f32 %v872_v6, %v2182_v58 }
 0xb36   :  { %v874_v9 = vsub.f32 %v869_v3, %v873_v8 }
 0xb38   :  { %v875_v10 = vmul.f32 %v874_v9, %v874_v9 }
 0xb3a   :  { %v876_v11 = vsel %vm225_vm12, %v875_v10, 0.0 }
 0xb3b   :  { %877 = vadd.xlane.f32.xlu1 %v876_v11 }
 0xbae   :  { %v878_v16 = vpop.xlane.xlu1 %877 }
 0xbaf   :  { %v879_v17 = vmul.f32 %v878_v16, %v2182_v58 }
 0xbb1   :  { %v880_v19 = vadd.f32 1e-05, %v879_v17 }
 0xbb3   :  { %1930 = vrsqrt.f32 %v880_v19  ;;  %vm887_vm6 = vweird.f32 %v880_v19 }
 0xbb9   :  { %v1931_v20 = vpop.eup %1930 }
 0xbba   :  { %v882_v21 = vmul.f32 %v1931_v20, %v880_v19  ;;  %vm888_vm4 = vweird.f32 %v1931_v20 }
 0xbbb   :  { %vm889_vm7 = vmor %vm887_vm6, %vm888_vm4 }
 0xbbc   :  { %v883_v22 = vmul.f32 %v1931_v20, %v882_v21 }
 0xbbe   :  { %v884_v23 = vmul.f32 0.5, %v883_v22 }
 0xbc0   :  { %v885_v24 = vsub.f32 1.5, %v884_v23 }
 0xbc2   :  { %v886_v25 = vmul.f32 %v1931_v20, %v885_v24 }
 0xbc4   :  { %v890_v27 = vsel %vm889_vm7, %v1931_v20, %v886_v25 }
 0xbc5   :  { %v891_v29 = vmul.f32 %v890_v27, %v874_v9 }
 0xbc7   :  { %v893_v30 = vmul.f32 %v1885_v26, %v891_v29 }
 0xbc9   :  { %v2217_v31 = vadd.f32 %v1886_v28, %v893_v30 }
 0xbcb   :  { %v909_v32 = vpack.c.bf16 %v2217_v31, %v2217_v31 }
 0xbcd   :  { %1741 = vmatmul.msk.bf16.vlgmr.msrb.gmra.mxu2 %vm225_vm12, %v909_v32 }
 0xc50   :  { %v935_v34 = vpop.f32.mrf.mxu2 }
 0xc51   :  { %v936_v35 = vadd.f32 %v1887_v33, %v935_v34 }
 0xc53   :  { %1252 = vrot.lane.b32.xlu0 %v936_v35, %s2019_s22  ;;  %1045 = vrot.lane.b32.xlu2 %v936_v35, %s2017_s20  ;;  %v939_v36 = vmul.f32 0.35355338, %v936_v35  ;;  %v1022_v16 = vpack.c.bf16 %v936_v35, %v936_v35 }
 0xc54   :  { %941 = vrot.lane.b32.xlu1 %v936_v35, %s2018_s21 }
 0xc55   :  { %v976_v38 = vpack.c.bf16 %v939_v36, %v939_v36 }
 0xc58   :  { %v937_v37 = vpop.f32.mrf.mxu2 }
 0xc5b   :  { %1288 = vrot.lane.b32.xlu0 %v976_v38, %s2022_s25 }
 0xc5c   :  { %1149 = vrot.lane.b32.xlu1 %v936_v35, %s2016_s19 }
 0xc64   :  { %1082 = vrot.lane.b32.xlu1 %v976_v38, %s2021_s24 }
 0xc6c   :  { %1185 = vrot.lane.b32.xlu1 %v976_v38, %s2024_s26 }
 0xcad   :  { %v1046_v39 = vpop.permute.xlu2 %1045 }
 0xcc5   :  { %v1253_v44 = vpop.permute.xlu0 %1252 }
 0xcc6   :  { %v942_v42 = vpop.permute.xlu1 %941 }
 0xcc7   :  { %v1864_v43 = vpack.i.bf16 %v1046_v39, %v942_v42 }
 0xcc9   :  { %1865 = vxpose.xlu2.b32.start.end [1/1] (short) (narrow) %v1864_v43, 8 }
 0xccd   :  { %v1289_v62 = vpop.permute.xlu0 %1288 }
 0xcce   :  { %v1150_v45 = vpop.permute.xlu1 %1149 }
 0xccf   :  { %v1871_v46 = vpack.i.bf16 %v1253_v44, %v1150_v45 }
 0xcd1   :  { %1872 = vxpose.xlu1.b32.start.end [1/1] (short) (narrow) %v1871_v46, 8 }
 0xcd6   :  { %v1083_v48 = vpop.permute.xlu1 %1082 }
 0xcde   :  { %v1186_v15 = vpop.permute.xlu1 %1185 }
 0xd62   :  { %v1866_v47 = vpop.trf.xlu2 }
 0xd63   :  { %v1870_v49 = vunpack.i.h.bf16 %v1866_v47  ;;  %v1867_v50 = vunpack.i.l.bf16 %v1866_v47 }
 0xd65   :  { %v977_v51 = vpack.c.bf16 %v1867_v50, %v1867_v50  ;;  %v1080_v52 = vpack.c.bf16 %v1870_v49, %v1870_v49 }
 0xd67   :  { %v982_v53 = vsel %vm285_vm13, %v977_v51, 0  ;;  %v1088_v54 = vsel %vm285_vm13, %v1080_v52, 0 }
 0xd68   :  { %991 = vmatpush.bf16.msrb.mxu3 %v982_v53  ;;  %1097 = vmatpush.bf16.msra.mxu0 %v1088_v54 }
 0xd6b   :  { %1742 = vmatmul.msk.bf16.vlgmr.msrb.gmra.mxu3 %vm281_vm14, %v976_v38  ;;  %1744 = vmatmul.msk.bf16.vlgmr.msra.gmra.mxu0 %vm281_vm14, %v1083_v48 }
 0xd75   :  { %v1873_v55 = vpop.trf.xlu1 }
 0xd76   :  { %v1877_v14 = vunpack.i.h.bf16 %v1873_v55  ;;  %v1874_v56 = vunpack.i.l.bf16 %v1873_v55 }
 0xd78   :  { %v1184_v57 = vpack.c.bf16 %v1874_v56, %v1874_v56  ;;  %v1287_v59 = vpack.c.bf16 %v1877_v14, %v1877_v14 }
 0xd7a   :  { %v1191_v60 = vsel %vm285_vm13, %v1184_v57, 0  ;;  %v1294_v61 = vsel %vm285_vm13, %v1287_v59, 0 }
 0xd7b   :  { %1200 = vmatpush.bf16.msra.mxu3 %v1191_v60  ;;  %1303 = vmatpush.bf16.msrb.mxu0 %v1294_v61 }
 0xd7e   :  { %1746 = vmatmul.msk.bf16.vlgmr.msra.gmra.mxu3 %vm281_vm14, %v1186_v15  ;;  %1748 = vmatmul.msk.bf16.vlgmr.msrb.gmra.mxu0 %vm281_vm14, %v1289_v62 }
 0xde8   :  { %v1099_v7 = vpop.f32.mrf.mxu0 }
 0xde9   :  { %v1100_v63 = vadd.f32 %v1099_v7, %v2126_v41 }
 0xdeb   :  { %v1103_v0 = vsel %vm281_vm14, %v1100_v63, -inf }
 0xdec   :  { %1104 = vmax.xlane.f32.xlu0 %v1103_v0 }
 0xdee   :  { %v993_v1 = vpop.f32.mrf.mxu3 }
 0xdef   :  { %v994_v2 = vadd.f32 %v993_v1, %v2126_v41 }
 0xdf0   :  { %v1101_v3 = vpop.f32.mrf.mxu0 }
 0xdf1   :  { %v997_v4 = vsel %vm281_vm14, %v994_v2, -inf }
 0xdf2   :  { %998 = vmax.xlane.f32.xlu2 %v997_v4 }
 0xdf6   :  { %v995_v5 = vpop.f32.mrf.mxu3 }
 0xdfb   :  { %v1305_v6 = vpop.f32.mrf.mxu0 }
 0xdfc   :  { %v1306_v8 = vadd.f32 %v1305_v6, %v2126_v41 }
 0xdfe   :  { %v1309_v9 = vsel %vm281_vm14, %v1306_v8, -inf }
 0xdff   :  { %1310 = vmax.xlane.f32.xlu0 %v1309_v9 }
 0xe01   :  { %v1202_v10 = vpop.f32.mrf.mxu3 }
 0xe02   :  { %v1203_v11 = vadd.f32 %v1202_v10, %v2126_v41 }
 0xe03   :  { %v1307_v12 = vpop.f32.mrf.mxu0 }
 0xe04   :  { %v1206_v13 = vsel %vm281_vm14, %v1203_v11, -inf }
 0xe05   :  { %1207 = vmax.xlane.f32.xlu1 %v1206_v13 }
 0xe09   :  { %v1204_v17 = vpop.f32.mrf.mxu3 }
 0xe0a   :  { %1231 = vrot.lane.b32.xlu2 %v1022_v16, %s2025_s27 }
 0xe13   :  { %1128 = vrot.lane.b32.xlu0 %v1022_v16, %s2027_s29 }
 0xe1e   :  { %1334 = vrot.lane.b32.xlu1 %v1022_v16, %s2026_s28 }
 0xe5f   :  { %v1105_v19 = vpop.xlane.xlu0 %1104 }
 0xe60   :  { %v1106_v20 = vsub.f32 %v1100_v63, %v1105_v19 }
 0xe62   :  { %v1107_v21 = vmul.f32 1.442695, %v1106_v20 }
 0xe64   :  { %1932 = vpow2.f32 %v1107_v21 }
 0xe65   :  { %v999_v22 = vpop.xlane.xlu2 %998 }
 0xe66   :  { %v1000_v23 = vsub.f32 %v994_v2, %v999_v22 }
 0xe68   :  { %v1001_v24 = vmul.f32 1.442695, %v1000_v23 }
 0xe6a   :  { %v1933_v41 = vpop.eup %1932  ;;  %1934 = vpow2.f32 %v1001_v24 }
 0xe6b   :  { %v1109_v25 = vsel %vm281_vm14, %v1933_v41, 0.0 }
 0xe6c   :  { %1110 = vadd.xlane.f32.xlu0 %v1109_v25 }
 0xe6d   :  { %v1232_v24 = vpop.permute.xlu2 %1231 }
 0xe70   :  { %v2249_v26 = vpop.eup %1934 }
 0xe71   :  { %v1003_v29 = vsel %vm281_vm14, %v2249_v26, 0.0 }
 0xe72   :  { %v1311_v27 = vpop.xlane.xlu0 %1310 }
 0xe73   :  { %v1312_v28 = vsub.f32 %v1306_v8, %v1311_v27 }
 0xe74   :  { %1004 = vadd.xlane.f32.xlu0 %v1003_v29  ;;  %v1237_v29 = vsel %vm285_vm13, %v1232_v24, 0  ;;  %v1891_v24 = vld [vmem:[#allocation2 + $0xe] ss:$0 sm:$0xff] }
 0xe75   :  { %v1313_v30 = vmul.f32 1.442695, %v1312_v28 }
 0xe77   :  { %1936 = vpow2.f32 %v1313_v30 }
 0xe78   :  { %v1208_v32 = vpop.xlane.xlu1 %1207 }
 0xe79   :  { %v1209_v33 = vsub.f32 %v1203_v11, %v1208_v32 }
 0xe7b   :  { %v1210_v34 = vmul.f32 1.442695, %v1209_v33 }
 0xe7d   :  { %v2253_v35 = vpop.eup %1936  ;;  %1938 = vpow2.f32 %v1210_v34 }
 0xe7e   :  { %v1315_v36 = vsel %vm281_vm14, %v2253_v35, 0.0 }
 0xe7f   :  { %1316 = vadd.xlane.f32.xlu0 %v1315_v36 }
 0xe83   :  { %v2257_v37 = vpop.eup %1938 }
 0xe84   :  { %v1212_v42 = vsel %vm281_vm14, %v2257_v37, 0.0 }
 0xe85   :  { %v1129_v38 = vpop.permute.xlu0 %1128 }
 0xe86   :  { %v1134_v39 = vsel %vm285_vm13, %v1129_v38, 0 }
 0xe87   :  { %1143 = vmatpush.bf16.msra.mxu2 %v1134_v39  ;;  %1213 = vadd.xlane.f32.xlu0 %v1212_v42 }
 0xe90   :  { %v1335_v43 = vpop.permute.xlu1 %1334 }
 0xe91   :  { %v1340_v44 = vsel %vm285_vm13, %v1335_v43, 0 }
 0xe92   :  { %1349 = vmatpush.bf16.msrb.mxu2 %v1340_v44 }
 0xe9b   :  { %1024 = vrot.lane.b32.xlu0 %v1022_v16, %s2020_s23 }
 0xedf   :  { %v1111_v45 = vpop.xlane.xlu0 %1110 }
 0xee0   :  { %1940 = vrcp.f32 %v1111_v45  ;;  %v1123_v49 = vand.u32 2147483648, %v1111_v45  ;;  %v1121_v52 = vand.u32 2147483647, %v1111_v45  ;;  %vm1117_vm9 = vweird.f32 %v1111_v45 }
 0xee2   :  { %v1124_v54 = vor.u32 1.1754944e-38, %v1123_v49  ;;  %vm1122_vm11 = vcmp.eq.f32.partialorder %v1121_v52, 8.507059e+37 }
 0xee6   :  { %v1941_v46 = vpop.eup %1940 }
 0xee7   :  { %v1113_v47 = vmul.f32 %v1941_v46, %v1111_v45  ;;  %v1005_v50 = vpop.xlane.xlu0 %1004  ;;  %vm1118_vm8 = vweird.f32 %v1941_v46 }
 0xee8   :  { %1942 = vrcp.f32 %v1005_v50  ;;  %vm1119_vm10 = vmor %vm1117_vm9, %vm1118_vm8  ;;  %v1017_v11 = vand.u32 2147483648, %v1005_v50  ;;  %vm1011_vm7 = vweird.f32 %v1005_v50  ;;  %v1015_v13 = vand.u32 2147483647, %v1005_v50 }
 0xee9   :  { %v1114_v48 = vsub.f32 1.0, %v1113_v47 }
 0xeea   :  { %v1018_v21 = vor.u32 1.1754944e-38, %v1017_v11  ;;  %vm1016_vm9 = vcmp.eq.f32.partialorder %v1015_v13, 8.507059e+37 }
 0xeeb   :  { %v1115_v51 = vmul.f32 %v1941_v46, %v1114_v48 }
 0xeed   :  { %v1116_v53 = vadd.f32 %v1941_v46, %v1115_v51 }
 0xeee   :  { %v1943_v57 = vpop.eup %1942 }
 0xeef   :  { %v1120_v15 = vsel %vm1119_vm10, %v1941_v46, %v1116_v53  ;;  %v1007_v60 = vmul.f32 %v1943_v57, %v1005_v50  ;;  %vm1012_vm4 = vweird.f32 %v1943_v57  ;;  %v1823_v50 = vld [vmem:[%s2336_s3 + $0x10] sm:$0xff] }
 0xef0   :  { %v1125_v55 = vsel %vm1122_vm11, %v1124_v54, %v1120_v15  ;;  %vm1013_vm8 = vmor %vm1011_vm7, %vm1012_vm4 }
 0xef1   :  { %v1126_v14 = vmul.f32 %v1933_v41, %v1125_v55  ;;  %v1008_v62 = vsub.f32 1.0, %v1007_v60 }
 0xef2   :  { %v1317_v56 = vpop.xlane.xlu0 %1316 }
 0xef3   :  { %1944 = vrcp.f32 %v1317_v56  ;;  %v1127_v59 = vpack.c.bf16 %v1126_v14, %v1126_v14  ;;  %v1329_v1 = vand.u32 2147483648, %v1317_v56  ;;  %v1009_v2 = vmul.f32 %v1943_v57, %v1008_v62 }
 0xef4   :  { %v1327_v4 = vand.u32 2147483647, %v1317_v56  ;;  %vm1323_vm1 = vweird.f32 %v1317_v56 }
 0xef5   :  { %1745 = vmatmul.msk.bf16.vlgmr.msra.gmra.mxu2 %vm281_vm14, %v1127_v59  ;;  %v1330_v6 = vor.u32 1.1754944e-38, %v1329_v1  ;;  %v1010_v8 = vadd.f32 %v1943_v57, %v1009_v2 }
 0xef6   :  { %vm1328_vm6 = vcmp.eq.f32.partialorder %v1327_v4, 8.507059e+37 }
 0xef7   :  { %v1014_v17 = vsel %vm1013_vm8, %v1943_v57, %v1010_v8 }
 0xef8   :  { %v1019_v22 = vsel %vm1016_vm9, %v1018_v21, %v1014_v17 }
 0xef9   :  { %v1945_v61 = vpop.eup %1944  ;;  %v1020_v41 = vmul.f32 %v2249_v26, %v1019_v22 }
 0xefa   :  { %v1319_v7 = vmul.f32 %v1945_v61, %v1317_v56  ;;  %v1214_v63 = vpop.xlane.xlu0 %1213  ;;  %vm1324_vm15 = vweird.f32 %v1945_v61  ;;  %v1888_v56 = vld [vmem:[#allocation2 + $0xd] ss:$0 sm:$0xff] }
 0xefb   :  { %1946 = vrcp.f32 %v1214_v63  ;;  %vm1325_vm2 = vmor %vm1323_vm1, %vm1324_vm15  ;;  %v1021_v30 = vpack.c.bf16 %v1020_v41, %v1020_v41  ;;  %v1226_v33 = vand.u32 2147483648, %v1214_v63  ;;  %vm1220_vm11 = vweird.f32 %v1214_v63 }
 0xefc   :  { %v1320_v0 = vsub.f32 1.0, %v1319_v7  ;;  %v1224_v34 = vand.u32 2147483647, %v1214_v63 }
 0xefd   :  { %v1227_v36 = vor.u32 1.1754944e-38, %v1226_v33  ;;  %v1830_v33 = vld [vmem:[%s2338_s5 + $0x38] sm:$0xff] }
 0xefe   :  { %v1321_v3 = vmul.f32 %v1945_v61, %v1320_v0  ;;  %vm1225_vm1 = vcmp.eq.f32.partialorder %v1224_v34, 8.507059e+37  ;;  %1549 = vmatpush.bf16.msra.mxu0 %v1830_v33  ;;  %v1829_v34 = vld [vmem:[%s2338_s5 + $0x30] sm:$0xff] }
 0xf00   :  { %v1322_v5 = vadd.f32 %v1945_v61, %v1321_v3  ;;  %v1826_v3 = vld [vmem:[%s2337_s4 + $0x18] sm:$0xff] }
 0xf01   :  { %v1947_v10 = vpop.eup %1946 }
 0xf02   :  { %v1326_v9 = vsel %vm1325_vm2, %v1945_v61, %v1322_v5  ;;  %v1216_v19 = vmul.f32 %v1947_v10, %v1214_v63  ;;  %vm1221_vm10 = vweird.f32 %v1947_v10  ;;  %1550 = vmatpush.bf16.msra.mxu0 %v1829_v34 }
 0xf03   :  { %v1331_v12 = vsel %vm1328_vm6, %v1330_v6, %v1326_v9  ;;  %vm1222_vm15 = vmor %vm1220_vm11, %vm1221_vm10 }
 0xf04   :  { %v1332_v16 = vmul.f32 %v2253_v35, %v1331_v12  ;;  %v1217_v23 = vsub.f32 1.0, %v1216_v19  ;;  %v1890_v19 = vld [vmem:[#allocation2 + $0x11] ss:$0 sm:$0xff] }
 0xf06   :  { %v1333_v20 = vpack.c.bf16 %v1332_v16, %v1332_v16  ;;  %v1218_v27 = vmul.f32 %v1947_v10, %v1217_v23  ;;  %v1889_v16 = vld [vmem:[#allocation2 + $0x10] ss:$0 sm:$0xff] }
 0xf08   :  { %1749 = vmatmul.msk.bf16.vlgmr.msrb.gmra.mxu2 %vm281_vm14, %v1333_v20  ;;  %v1219_v32 = vadd.f32 %v1947_v10, %v1218_v27 }
 0xf0a   :  { %v1223_v35 = vsel %vm1222_vm15, %v1947_v10, %v1219_v32 }
 0xf0b   :  { %v1228_v26 = vsel %vm1225_vm1, %v1227_v36, %v1223_v35  ;;  %vm1650_vm1 = vcmask 60416  }
 0xf0c   :  { %v1229_v38 = vmul.f32 %v2257_v37, %v1228_v26  ;;  %v1824_v37 = vld [vmem:[%s2336_s3 + $0x18] sm:$0xff]  ;;  %v1828_v26 = vld [vmem:[%s2338_s5 + $0x28] sm:$0xff] }
 0xf0d   :  { %v1025_v25 = vpop.permute.xlu0 %1024  ;;  %1398 = vmatpush.bf16.msrb.mxu3 %v1824_v37  ;;  %1551 = vmatpush.bf16.msra.mxu0 %v1828_v26 }
 0xf0e   :  { %v1030_v28 = vsel %vm285_vm13, %v1025_v25, 0  ;;  %v1230_v39 = vpack.c.bf16 %v1229_v38, %v1229_v38 }
 0xf0f   :  { %1039 = vmatpush.bf16.msrb.mxu1 %v1030_v28 }
 0xf11   :  { %1399 = vmatpush.bf16.msrb.mxu3 %v1823_v50 }
 0xf12   :  { %1743 = vmatmul.msk.bf16.vlgmr.msrb.gmra.mxu1 %vm281_vm14, %v1021_v30 }
 0xf13   :  { %1246 = vmatpush.bf16.msra.mxu1 %v1237_v29 }
 0xf17   :  { %1460 = vmatpush.bf16.msrb.mxu1 %v1826_v3  ;;  %v1892_v3 = vld [vmem:[#allocation2 + $0xf] ss:$0 sm:$0xff] }
 0xf22   :  { %1747 = vmatmul.msk.bf16.vlgmr.msra.gmra.mxu1 %vm281_vm14, %v1230_v39 }
 0xf78   :  { %v1145_v42 = vpop.f32.mrf.mxu2 }
 0xf79   :  { %1356 = vrot.lane.b32.xlu0 %v1145_v42, %s2012_s11 }
 0xf80   :  { %v1147_v43 = vpop.f32.mrf.mxu2 }
 0xf8b   :  { %v1351_v44 = vpop.f32.mrf.mxu2 }
 0xf8c   :  { %1364 = vrot.lane.b32.xlu1 %v1351_v44, %s2028_s30  ;;  %v1827_v44 = vld [vmem:[%s2338_s5 + $0x20] sm:$0xff] }
 0xf8d   :  { %1552 = vmatpush.bf16.msra.mxu0 %v1827_v44 }
 0xf8f   :  { %v1041_v45 = vpop.f32.mrf.mxu1 }
 0xf93   :  { %v1353_v46 = vpop.f32.mrf.mxu2 }
 0xf97   :  { %v1043_v47 = vpop.f32.mrf.mxu1 }
 0xf9f   :  { %v1248_v48 = vpop.f32.mrf.mxu1 }
 0xfa0   :  { %1360 = vrot.lane.b32.xlu0 %v1248_v48, %s2029_s9 }
 0xfa7   :  { %v1250_v49 = vpop.f32.mrf.mxu1 }
 0xfeb   :  { %v1357_v51 = vpop.permute.xlu0 %1356 }
 0xfec   :  { %v1367_v52 = vsel %vm281_vm14, %v1041_v45, %v1357_v51 }
 0xffe   :  { %v1365_v54 = vpop.permute.xlu1 %1364 }
0x1012   :  { %v1361_v53 = vpop.permute.xlu0 %1360 }
0x1013   :  { %v1368_v15 = vsel %vm56_vm0, %v1367_v52, %v1361_v53 }
0x1014   :  { %v1369_v55 = vsel %vm674_vm5, %v1368_v15, %v1365_v54 }
0x1015   :  { %v1375_v14 = vpack.c.bf16 %v1369_v55, %v1369_v55 }
0x1017   :  { %1762 = vmatmul.msk.bf16.vlgmr.msrb.gmra.mxu3 %vm225_vm12, %v1375_v14 }
0x109a   :  { %v1401_v57 = vpop.f32.mrf.mxu3 }
0x109b   :  { %v1402_v59 = vadd.f32 %v1888_v56, %v1401_v57 }
0x109d   :  { %v1405_v60 = vadd.f32 %v1402_v59, %v2217_v31  ;;  %v1825_v31 = vld [vmem:[%s2337_s4 + $0x10] sm:$0xff] }
0x109e   :  { %1461 = vmatpush.bf16.msrb.mxu1 %v1825_v31 }
0x109f   :  { %v1406_v61 = vsel %vm225_vm12, %v1405_v60, 0.0 }
0x10a0   :  { %1407 = vadd.xlane.f32.xlu2 %v1406_v61 }
0x10a2   :  { %v1403_v62 = vpop.f32.mrf.mxu3 }
0x1113   :  { %v1408_v7 = vpop.xlane.xlu2 %1407 }
0x1114   :  { %v1409_v63 = vmul.f32 %v1408_v7, %v2182_v58 }
0x1116   :  { %v1410_v0 = vsub.f32 %v1405_v60, %v1409_v63 }
0x1118   :  { %v1411_v1 = vmul.f32 %v1410_v0, %v1410_v0 }
0x111a   :  { %v1412_v2 = vsel %vm225_vm12, %v1411_v1, 0.0 }
0x111b   :  { %1413 = vadd.xlane.f32.xlu0 %v1412_v2 }
0x118e   :  { %v1414_v4 = vpop.xlane.xlu0 %1413 }
0x118f   :  { %v1415_v5 = vmul.f32 %v1414_v4, %v2182_v58 }
0x1191   :  { %v1416_v6 = vadd.f32 1e-05, %v1415_v5 }
0x1193   :  { %1948 = vrsqrt.f32 %v1416_v6  ;;  %vm1423_vm13 = vweird.f32 %v1416_v6 }
0x1199   :  { %v1949_v8 = vpop.eup %1948 }
0x119a   :  { %v1418_v9 = vmul.f32 %v1949_v8, %v1416_v6  ;;  %vm1424_vm0 = vweird.f32 %v1949_v8 }
0x119b   :  { %vm1425_vm14 = vmor %vm1423_vm13, %vm1424_vm0 }
0x119c   :  { %v1419_v10 = vmul.f32 %v1949_v8, %v1418_v9 }
0x119e   :  { %v1420_v11 = vmul.f32 0.5, %v1419_v10 }
0x11a0   :  { %v1421_v12 = vsub.f32 1.5, %v1420_v11 }
0x11a2   :  { %v1422_v13 = vmul.f32 %v1949_v8, %v1421_v12 }
0x11a4   :  { %v1426_v17 = vsel %vm1425_vm14, %v1949_v8, %v1422_v13 }
0x11a5   :  { %v1427_v20 = vmul.f32 %v1426_v17, %v1410_v0 }
0x11a7   :  { %v1429_v21 = vmul.f32 %v1889_v16, %v1427_v20 }
0x11a9   :  { %v1431_v22 = vadd.f32 %v1890_v19, %v1429_v21 }
0x11ab   :  { %v1437_v23 = vpack.c.bf16 %v1431_v22, %v1431_v22 }
0x11ad   :  { %1775 = vmatmul.msk.bf16.vlgmr.msrb.gmra.mxu1 %vm225_vm12, %v1437_v23 }
0x122a   :  { %v1463_v41 = vpop.f32.mrf.mxu1 }
0x122b   :  { %v1464_v25 = vadd.f32 %v1891_v24, %v1463_v41 }
0x122d   :  { %v1467_v27 = vmul.f32 0.70710677, %v1464_v25  ;;  %v1504_v63 = vmul.f32 0.5, %v1464_v25  ;;  %v1893_v25 = vld [vmem:[#allocation2 + $0x12] ss:$0 sm:$0xff] }
0x122f   :  { %v1468_v28 = vand.u32 2147483647, %v1467_v27  ;;  %vm1501_vm7 = vcmp.lt.f32.partialorder %v1467_v27, 0.0 }
0x1231   :  { %v1469_v29 = vmul.f32 0.3275911, %v1468_v28  ;;  %v1495_v49 = vsub.f32 0.0, %v1468_v28 }
0x1232   :  { %v1465_v30 = vpop.f32.mrf.mxu1 }
0x1233   :  { %v1470_v32 = vadd.f32 1.0, %v1469_v29  ;;  %v1496_v51 = vmul.f32 %v1495_v49, %v1468_v28  ;;  %v1894_v29 = vld [vmem:[#allocation2 + $0x13] ss:$0 sm:$0xff] }
0x1235   :  { %1950 = vrcp.f32 %v1470_v32  ;;  %v1482_v39 = vand.u32 2147483648, %v1470_v32  ;;  %v1480_v43 = vand.u32 2147483647, %v1470_v32  ;;  %vm1476_vm2 = vweird.f32 %v1470_v32 }
0x1236   :  { %v1497_v54 = vmul.f32 1.442695, %v1496_v51  ;;  %v1895_v51 = vld [vmem:[#allocation2 + $0x1] ss:$0 sm:$0xff] }
0x1237   :  { %v1483_v46 = vor.u32 1.1754944e-38, %v1482_v39  ;;  %vm1481_vm6 = vcmp.eq.f32.partialorder %v1480_v43, 8.507059e+37  ;;  %v1832_v39 = vld [vmem:[%s2339_s6 + $0x8] sm:$0xff] }
0x1238   :  { %1952 = vpow2.f32 %v1497_v54  ;;  %1638 = vmatpush.bf16.msra.mxu2 %v1832_v39  ;;  %v1896_v54 = vld [vmem:[#allocation2 + $0x2] ss:$0 sm:$0xff] }
0x123b   :  { %v1951_v35 = vpop.eup %1950 }
0x123c   :  { %v1472_v36 = vmul.f32 %v1951_v35, %v1470_v32  ;;  %vm1477_vm5 = vweird.f32 %v1951_v35 }
0x123d   :  { %vm1478_vm4 = vmor %vm1476_vm2, %vm1477_vm5 }
0x123e   :  { %v1473_v38 = vsub.f32 1.0, %v1472_v36  ;;  %v1953_v59 = vpop.eup %1952 }
0x1240   :  { %v1474_v42 = vmul.f32 %v1951_v35, %v1473_v38 }
0x1242   :  { %v1475_v45 = vadd.f32 %v1951_v35, %v1474_v42  ;;  %v1831_v42 = vld [vmem:[%s2339_s6] sm:$0xff]  ;;  %s2031_s6 = smov [#allocation5]  }
0x1243   :  { %1639 = vmatpush.bf16.msra.mxu2 %v1831_v42  ;;  %s1657_s12 = sshll.u32 %s2031_s6, 4  ;;  %s1658_s12 = int_to_ptr.vmem [resolvable:$true] %s1657_s12 }
0x1244   :  { %v1479_v47 = vsel %vm1478_vm4, %v1951_v35, %v1475_v45 }
0x1245   :  { %v1484_v48 = vsel %vm1481_vm6, %v1483_v46, %v1479_v47 }
0x1246   :  { %v1486_v37 = vmul.f32 1.0614054, %v1484_v48 }
0x1248   :  { %v1487_v50 = vadd.f32 -1.4531521, %v1486_v37 }
0x124a   :  { %v1488_v52 = vmul.f32 %v1487_v50, %v1484_v48 }
0x124c   :  { %v1489_v53 = vadd.f32 1.4214138, %v1488_v52 }
0x124e   :  { %v1490_v15 = vmul.f32 %v1489_v53, %v1484_v48 }
0x1250   :  { %v1491_v55 = vadd.f32 -0.28449672, %v1490_v15 }
0x1252   :  { %v1492_v14 = vmul.f32 %v1491_v55, %v1484_v48 }
0x1254   :  { %v1493_v56 = vadd.f32 0.2548296, %v1492_v14 }
0x1256   :  { %v1494_v57 = vmul.f32 %v1493_v56, %v1484_v48 }
0x1258   :  { %v1499_v60 = vmul.f32 %v1953_v59, %v1494_v57 }
0x125a   :  { %v1500_v61 = vsub.f32 1.0, %v1499_v60 }
0x125c   :  { %v1502_v62 = vsub.f32 0.0, %v1500_v61 }
0x125e   :  { %v1503_v7 = vsel %vm1501_vm7, %v1502_v62, %v1500_v61 }
0x125f   :  { %v1505_v0 = vadd.f32 1.0, %v1503_v7 }
0x1261   :  { %v1506_v1 = vmul.f32 %v1505_v0, %v1504_v63 }
0x1263   :  { %v1516_v2 = vpack.c.bf16 %v1506_v1, %v1506_v1 }
0x1265   :  { %1800 = vmatmul.msk.bf16.vlgmr.msra.gmra.mxu0 %vm852_vm3, %v1516_v2 }
0x12e2   :  { %v1554_v31 = vpop.f32.mrf.mxu0 }
0x12e3   :  { %v1555_v4 = vadd.f32 %v1892_v3, %v1554_v31 }
0x12e5   :  { %v1558_v5 = vadd.f32 %v1555_v4, %v1431_v22 }
0x12e7   :  { %v1559_v6 = vsel %vm225_vm12, %v1558_v5, 0.0 }
0x12e8   :  { %1560 = vadd.xlane.f32.xlu1 %v1559_v6 }
0x12ea   :  { %v1556_v8 = vpop.f32.mrf.mxu0 }
0x135b   :  { %v1561_v9 = vpop.xlane.xlu1 %1560 }
0x135c   :  { %v1562_v10 = vmul.f32 %v1561_v9, %v2182_v58 }
0x135e   :  { %v1563_v11 = vsub.f32 %v1558_v5, %v1562_v10 }
0x1360   :  { %v1564_v12 = vmul.f32 %v1563_v11, %v1563_v11 }
0x1362   :  { %v1565_v13 = vsel %vm225_vm12, %v1564_v12, 0.0 }
0x1363   :  { %1566 = vadd.xlane.f32.xlu2 %v1565_v13 }
0x13d6   :  { %v1567_v16 = vpop.xlane.xlu2 %1566 }
0x13d7   :  { %v1568_v17 = vmul.f32 %v1567_v16, %v2182_v58 }
0x13d9   :  { %v1569_v19 = vadd.f32 1e-05, %v1568_v17 }
0x13db   :  { %1954 = vrsqrt.f32 %v1569_v19  ;;  %vm1576_vm8 = vweird.f32 %v1569_v19 }
0x13e1   :  { %v1955_v20 = vpop.eup %1954 }
0x13e2   :  { %v1571_v21 = vmul.f32 %v1955_v20, %v1569_v19  ;;  %vm1577_vm3 = vweird.f32 %v1955_v20 }
0x13e3   :  { %vm1578_vm9 = vmor %vm1576_vm8, %vm1577_vm3 }
0x13e4   :  { %v1572_v22 = vmul.f32 %v1955_v20, %v1571_v21 }
0x13e6   :  { %v1573_v23 = vmul.f32 0.5, %v1572_v22 }
0x13e8   :  { %v1574_v24 = vsub.f32 1.5, %v1573_v23 }
0x13ea   :  { %v1575_v41 = vmul.f32 %v1955_v20, %v1574_v24 }
0x13ec   :  { %v1579_v27 = vsel %vm1578_vm9, %v1955_v20, %v1575_v41 }
0x13ed   :  { %v1580_v28 = vmul.f32 %v1579_v27, %v1563_v11 }
0x13ef   :  { %v1582_v30 = vmul.f32 %v1893_v25, %v1580_v28 }
0x13f1   :  { %v1584_v32 = vadd.f32 %v1894_v29, %v1582_v30 }
0x13f3   :  { %v1585_v33 = vsel %vm225_vm12, %v1584_v32, 0.0 }
0x13f4   :  { %1586 = vadd.xlane.f32.xlu0 %v1585_v33 }
0x1467   :  { %v1587_v34 = vpop.xlane.xlu0 %1586 }
0x1468   :  { %v1588_v35 = vmul.f32 %v1587_v34, %v2182_v58 }
0x146a   :  { %v1589_v36 = vsub.f32 %v1584_v32, %v1588_v35 }
0x146c   :  { %v1590_v26 = vmul.f32 %v1589_v36, %v1589_v36 }
0x146e   :  { %v1591_v38 = vsel %vm225_vm12, %v1590_v26, 0.0 }
0x146f   :  { %1592 = vadd.xlane.f32.xlu2 %v1591_v38 }
0x14e2   :  { %v1593_v43 = vpop.xlane.xlu2 %1592 }
0x14e3   :  { %v1594_v44 = vmul.f32 %v1593_v43, %v2182_v58  ;;  %v1897_v58 = vld [vmem:[#allocation2 + $0x3] ss:$0 sm:$0xff] }
0x14e5   :  { %v1595_v45 = vadd.f32 1e-05, %v1594_v44 }
0x14e7   :  { %1956 = vrsqrt.f32 %v1595_v45  ;;  %vm1602_vm11 = vweird.f32 %v1595_v45 }
0x14ed   :  { %v1957_v46 = vpop.eup %1956 }
0x14ee   :  { %v1597_v47 = vmul.f32 %v1957_v46, %v1595_v45  ;;  %vm1603_vm10 = vweird.f32 %v1957_v46 }
0x14ef   :  { %vm1604_vm15 = vmor %vm1602_vm11, %vm1603_vm10 }
0x14f0   :  { %v1598_v48 = vmul.f32 %v1957_v46, %v1597_v47 }
0x14f2   :  { %v1599_v49 = vmul.f32 0.5, %v1598_v48 }
0x14f4   :  { %v1600_v37 = vsub.f32 1.5, %v1599_v49 }
0x14f6   :  { %v1601_v50 = vmul.f32 %v1957_v46, %v1600_v37 }
0x14f8   :  { %v1605_v52 = vsel %vm1604_vm15, %v1957_v46, %v1601_v50 }
0x14f9   :  { %v1606_v53 = vmul.f32 %v1605_v52, %v1589_v36 }
0x14fb   :  { %v1608_v15 = vmul.f32 %v1895_v51, %v1606_v53 }
0x14fd   :  { %v1610_v55 = vadd.f32 %v1896_v54, %v1608_v15 }
0x14ff   :  { %v1615_v14 = vpack.c.bf16 %v1610_v55, %v1610_v55 }
0x1501   :  { %1809 = vmatmul.msk.bf16.vlgmr.msra.gmra.mxu2 %vm225_vm12, %v1615_v14 }
0x1584   :  { %v1641_v56 = vpop.f32.mrf.mxu2 }
0x1585   :  { %v1642_v57 = vadd.f32 %v1897_v58, %v1641_v56 }
0x1587   :  { %v1645_v59 = vmul.f32 %v1642_v57, %v2097_v40 }
0x1589   :  { %v1646_v60 = vadd.f32 %v1645_v59, %v2089_v18 }
0x158b   :  { %v1648_v61 = vrot.slane %v1646_v60, 4  ;;  %1651 = vst.msk [vmem:[#allocation5] sm:$0xf] %vm1650_vm1, %v1646_v60 }
0x158c   :  { %v1643_v62 = vpop.f32.mrf.mxu2 }
0x158d   :  { %1652 = vst.msk [vmem:[#allocation5 + $0x4] sm:$0xf] %vm1650_vm1, %v1648_v61 }
0x158e   :  { %1665 = dma.vmem_to_hbm [thread:$0]  %s1658_s12, 128, %s1660_s15, [#allocation4], %s2020_s23, %s2020_s23, %s2032_s0  }
0x158f   :  { %2008 = dma.done.wait [#allocation4], 128  }
0x1590   :  { %2009 = vsyncadd [#allocation4], 4294967168 }
0x1591   :  { %1670 = vsyncpa [#allocation3], 1 }
0x1592   :  { %1671 = vsyncpa [#allocation4], 1 }

</bundles_post_ra>
